<compile_context>
chip_gen: v6e
topology: v6e:2x2x1
jax: 0.10.0
libtpu: 0.0.40
codegen_flags: <defaults>
</compile_context>

<pallas_src>
import jax
import jax.numpy as jnp
from jax.experimental import pallas as pl
from jax.experimental.pallas import tpu as pltpu

# ---------------- small shapes consistent with the module ------------------
B = 2                   # batch
C_IN = 3                # image channels
H_IN = W_IN = 64        # input_size = (64, 64)
STRIDE = 4              # stand-in backbone spatial stride
C_FEAT = 32             # backbone feature channels
POOL = 4                # pooling_kernel_size
H_F, W_F = H_IN // STRIDE, W_IN // STRIDE      # 16, 16 feature map
H_P, W_P = H_F // POOL, W_F // POOL            # 4, 4 pooled feature map
HW_P = H_P * W_P                               # 16
D = C_FEAT * HW_P                              # 512 flattened feature dim
K = 8                                          # retained PCA components


# ------------------------------ Pallas kernel --------------------------------
def _dfm_kernel(x_ref, swt_ref, lh_ref, tslt_ref, wfl_ref, mean_ref,
                u_ref, ut_ref, hsel_ref, wsel_ref, wr_ref, wct_ref,
                smap_ref, score_ref):
    """Fused backbone-pool + PCA(FRE) + bilinear upsample for one image."""
    f32 = jnp.float32
    xb = x_ref[...]                                    # (C_IN*H_IN, W_IN), rows = (c_in, h)
    swt = swt_ref[...]                                 # (W_IN, W_P): subsample+pool, W axis

    # --- backbone subsample + avg_pool2d, scattered straight into the flattened
    #     (c, hp, wp) feature column layout; input channels stay on sublanes. ---
    tiled = jnp.zeros((C_IN, D), dtype=f32)
    for hp in range(H_P):
        rows = jnp.dot(lh_ref[hp], xb, preferred_element_type=f32)      # (C_IN, W_IN)  H pool
        pooled = jnp.dot(rows, swt, preferred_element_type=f32)         # (C_IN, W_P)   W pool
        tiled = tiled + jnp.dot(pooled, tslt_ref[hp],
                                preferred_element_type=f32)             # place at cols hp*W_P+wp

    # --- 1x1 conv (channel mix) as a 3-term FMA on the VPU (no K=3 MXU matmul) ---
    feats = jnp.sum(tiled * wfl_ref[...], axis=0, keepdims=True)        # (1, D)

    # --- PCA transform / inverse transform, FRE in centered space ---
    centered = feats - mean_ref[...]                                    # (1, D)
    proj = jnp.dot(centered, u_ref[...], preferred_element_type=f32)    # (1, K)
    recon = jnp.dot(proj, ut_ref[...], preferred_element_type=f32)      # (1, D)
    diff = centered - recon
    err2 = diff * diff                                                  # (1, D)

    # --- channel-summed FRE map on the pooled 4x4 grid ---
    fre = jnp.dot(hsel_ref[...] * err2, wsel_ref[...],
                  preferred_element_type=f32)                           # (H_P, W_P)

    # --- bilinear upsample, separable: wr @ fre @ wc.T ---
    up = jnp.dot(wr_ref[...], fre, preferred_element_type=f32)          # (H_IN, W_P)
    smap_ref[...] = jnp.dot(up, wct_ref[...], preferred_element_type=f32)   # (H_IN, W_IN)

    # --- per-image score = sum(err2) = sum(fre); padded lane-dense output ---
    s = jnp.sum(jnp.sum(fre, axis=1, keepdims=True), axis=0, keepdims=True)  # (1, 1)
    score_ref[...] = jnp.broadcast_to(s, (8, 128))


def pallas_dfm(x2d, p):
    zero2 = lambda b: (0, 0)
    zero3 = lambda b: (0, 0, 0)
    in_specs = [
        pl.BlockSpec((C_IN * H_IN, W_IN), lambda b: (b, 0)),   # image rows of batch b
        pl.BlockSpec((W_IN, W_P), zero2),                      # swt
        pl.BlockSpec((H_P, C_IN, C_IN * H_IN), zero3),         # lh   (H pool, per hp)
        pl.BlockSpec((H_P, W_P, D), zero3),                    # tslt (column placement)
        pl.BlockSpec((C_IN, D), zero2),                        # wfl  (1x1 conv weights, lane layout)
        pl.BlockSpec((1, D), zero2),                           # mean
        pl.BlockSpec((D, K), zero2),                           # u
        pl.BlockSpec((K, D), zero2),                           # u.T
        pl.BlockSpec((H_P, D), zero2),                         # hsel (row selector for fre)
        pl.BlockSpec((D, W_P), zero2),                         # wsel (col selector for fre)
        pl.BlockSpec((H_IN, H_P), zero2),                      # wr   (bilinear rows)
        pl.BlockSpec((W_P, W_IN), zero2),                      # wc.T (bilinear cols)
    ]
    out_specs = (
        pl.BlockSpec((H_IN, W_IN), lambda b: (b, 0)),          # score map rows for batch b
        pl.BlockSpec((8, 128), lambda b: (b, 0)),              # padded score tile
    )
    out_shape = (
        jax.ShapeDtypeStruct((B * H_IN, W_IN), jnp.float32),
        jax.ShapeDtypeStruct((B * 8, 128), jnp.float32),
    )
    return pl.pallas_call(
        _dfm_kernel,
        grid=(B,),
        in_specs=in_specs,
        out_specs=out_specs,
        out_shape=out_shape,
        compiler_params=pltpu.CompilerParams(dimension_semantics=("parallel",)),
    )(x2d, p["swt"], p["lh"], p["tslt"], p["wfl"], p["mean"], p["u"],
      p["ut"], p["hsel"], p["wsel"], p["wr"], p["wct"])


# --------------------------- parameter helpers -------------------------------
def bilinear_matrix(out_size, in_size):
    """W (out, in) s.t. out = W @ in matches bilinear resize, align_corners=False."""
    scale = in_size / out_size
    dst = jnp.arange(out_size, dtype=jnp.float32)
    src = (dst + 0.5) * scale - 0.5
    src = jnp.maximum(src, 0.0)                     # clamp negative src (PyTorch behavior)
    x0 = jnp.clip(jnp.floor(src).astype(jnp.int32), 0, in_size - 1)
    x1 = jnp.minimum(x0 + 1, in_size - 1)
    w1 = src - x0.astype(jnp.float32)
    w0 = 1.0 - w1
    m = jnp.zeros((out_size, in_size), jnp.float32)
    rows = jnp.arange(out_size)
    m = m.at[rows, x0].add(w0)
    m = m.at[rows, x1].add(w1)
    return m


def make_params(key):
    k1, k2, k3 = jax.random.split(key, 3)
    # TODO(synk): pretrained timm backbone has no Pallas equivalent; replaced by a
    # deterministic stride-4 subsample + 1x1 conv (channel mix) stand-in.
    w_feat = jax.random.normal(k1, (C_IN, C_FEAT), jnp.float32) * 0.5
    # PCA parameters (synthetic, deterministic): orthonormal columns + mean.
    u, _ = jnp.linalg.qr(jax.random.normal(k2, (D, K), jnp.float32))
    mean = jax.random.normal(k3, (1, D), jnp.float32) * 0.1

    # Combined subsample(::4) + avg_pool(4) along one spatial axis: (H_P, H_IN).
    cols = jnp.arange(H_IN)
    rows = jnp.arange(H_P)[:, None]
    s_axis = (((cols[None, :] // (STRIDE * POOL)) == rows)
              & (cols[None, :] % STRIDE == 0)).astype(jnp.float32) / POOL     # (4, 64)
    swt = s_axis.T                                                            # (64, 4)
    # Per-hp H-pooling matrices acting on (c_in, h) rows: (H_P, C_IN, C_IN*H_IN).
    lh = jnp.stack([jnp.kron(jnp.eye(C_IN, dtype=jnp.float32), s_axis[hp:hp + 1, :])
                    for hp in range(H_P)])
    # Column placement: feature index j = c_out*HW_P + hp*W_P + wp.
    j = jnp.arange(D)
    tslt = ((j[None, None, :] % HW_P) ==
            (jnp.arange(H_P)[:, None, None] * W_P + jnp.arange(W_P)[None, :, None])
            ).astype(jnp.float32)                                             # (H_P, W_P, D)
    wfl = w_feat[:, j // HW_P]                                                # (C_IN, D)
    # Selectors used to rebuild the channel-summed 4x4 FRE map from err2.
    hsel = (((j[None, :] % HW_P) // W_P) == jnp.arange(H_P)[:, None]).astype(jnp.float32)  # (H_P, D)
    wsel = ((j[:, None] % W_P) == jnp.arange(W_P)[None, :]).astype(jnp.float32)            # (D, W_P)
    # Separable bilinear upsample matrices.
    wr = bilinear_matrix(H_IN, H_P)                                           # (64, 4)
    wc = bilinear_matrix(W_IN, W_P)                                           # (64, 4)
    return dict(w_feat=w_feat, u=u, ut=u.T, mean=mean, swt=swt, lh=lh, tslt=tslt,
                wfl=wfl, hsel=hsel, wsel=wsel, wr=wr, wc=wc, wct=wc.T)


# ------------------------------ forward --------------------------------------
@jax.jit
def dfm_forward(batch, params):
    # Only free contiguous reshapes on the XLA side (no transposes / strided slices).
    x2d = batch.reshape(B * C_IN * H_IN, W_IN)
    smap_rows, score_pad = pallas_dfm(x2d, params)
    score_map = smap_rows.reshape(B, 1, H_IN, W_IN)
    score = score_pad.reshape(B, 8, 128)[:, 0, 0]
    return score_map, score


# ------------------------------ reference ------------------------------------
def dfm_reference(batch, params):
    x_sub = batch[:, :, ::STRIDE, ::STRIDE]
    feat = jnp.einsum("bchw,cf->bfhw", x_sub, params["w_feat"])
    pooled = feat.reshape(B, C_FEAT, H_P, POOL, W_P, POOL).mean(axis=(3, 5))
    features = pooled.reshape(B, -1)
    centered = features - params["mean"]
    proj = centered @ params["u"]
    recon = proj @ params["ut"]
    err2 = (centered - recon) ** 2
    score = err2.sum(axis=1)
    fre = err2.reshape(B, C_FEAT, H_P, W_P).sum(axis=1)                 # (B, h, w)
    smap = jnp.einsum("Hy,byx,Wx->bHW", params["wr"], fre, params["wc"])
    return smap[:, None], score


# -------------------------------- main ----------------------------------------
if __name__ == "__main__":
    key = jax.random.PRNGKey(0)
    k_img, k_par = jax.random.split(key)
    batch = jax.random.normal(k_img, (B, C_IN, H_IN, W_IN), jnp.float32)
    params = make_params(k_par)

    score_map, score = jax.block_until_ready(dfm_forward(batch, params))
    ref_map, ref_score = dfm_reference(batch, params)

    assert score_map.shape == (B, 1, H_IN, W_IN)
    assert score.shape == (B,)
    assert jnp.allclose(score_map, ref_map, rtol=1e-4, atol=1e-4)
    assert jnp.allclose(score, ref_score, rtol=1e-4, atol=1e-4)
    print("KERNEL_OK")
</pallas_src>

<mosaic_0001>
module attributes {stable_mosaic.version = 11 : i64} {
  func.func @_dfm_kernel(%arg0: i32, %arg1: memref<192x64xf32, #tpu.memory_space<vmem>>, %arg2: memref<64x4xf32, #tpu.memory_space<vmem>>, %arg3: memref<4x3x192xf32, #tpu.memory_space<vmem>>, %arg4: memref<4x4x512xf32, #tpu.memory_space<vmem>>, %arg5: memref<3x512xf32, #tpu.memory_space<vmem>>, %arg6: memref<1x512xf32, #tpu.memory_space<vmem>>, %arg7: memref<512x8xf32, #tpu.memory_space<vmem>>, %arg8: memref<8x512xf32, #tpu.memory_space<vmem>>, %arg9: memref<4x512xf32, #tpu.memory_space<vmem>>, %arg10: memref<512x4xf32, #tpu.memory_space<vmem>>, %arg11: memref<64x4xf32, #tpu.memory_space<vmem>>, %arg12: memref<4x64xf32, #tpu.memory_space<vmem>>, %arg13: memref<64x64xf32, #tpu.memory_space<vmem>>, %arg14: memref<8x128xf32, #tpu.memory_space<vmem>>) attributes {dimension_semantics = [#tpu.dimension_semantics<parallel>], iteration_bounds = array<i64: 2>, scalar_prefetch = 0 : i64, scratch_operands = 0 : i64, tpu.core_type = #tpu.core_type<tc>, window_params = [{transform_indices = @transform_0, window_bounds = array<i64: 192, 64>}, {pipeline_mode = #tpu.pipeline_mode<synchronous>, transform_indices = @transform_1, window_bounds = array<i64: 64, 4>}, {pipeline_mode = #tpu.pipeline_mode<synchronous>, transform_indices = @transform_2, window_bounds = array<i64: 4, 3, 192>}, {pipeline_mode = #tpu.pipeline_mode<synchronous>, transform_indices = @transform_3, window_bounds = array<i64: 4, 4, 512>}, {pipeline_mode = #tpu.pipeline_mode<synchronous>, transform_indices = @transform_4, window_bounds = array<i64: 3, 512>}, {pipeline_mode = #tpu.pipeline_mode<synchronous>, transform_indices = @transform_5, window_bounds = array<i64: 1, 512>}, {pipeline_mode = #tpu.pipeline_mode<synchronous>, transform_indices = @transform_6, window_bounds = array<i64: 512, 8>}, {pipeline_mode = #tpu.pipeline_mode<synchronous>, transform_indices = @transform_7, window_bounds = array<i64: 8, 512>}, {pipeline_mode = #tpu.pipeline_mode<synchronous>, transform_indices = @transform_8, window_bounds = array<i64: 4, 512>}, {pipeline_mode = #tpu.pipeline_mode<synchronous>, transform_indices = @transform_9, window_bounds = array<i64: 512, 4>}, {pipeline_mode = #tpu.pipeline_mode<synchronous>, transform_indices = @transform_10, window_bounds = array<i64: 64, 4>}, {pipeline_mode = #tpu.pipeline_mode<synchronous>, transform_indices = @transform_11, window_bounds = array<i64: 4, 64>}, {transform_indices = @transform_12, window_bounds = array<i64: 64, 64>}, {transform_indices = @transform_13, window_bounds = array<i64: 8, 128>}]} {
    %c0 = arith.constant 0 : index
    %c0_0 = arith.constant 0 : index
    %0 = vector.load %arg1[%c0, %c0_0] : memref<192x64xf32, #tpu.memory_space<vmem>>, vector<192x64xf32>
    %c0_1 = arith.constant 0 : index
    %c0_2 = arith.constant 0 : index
    %1 = vector.load %arg2[%c0_1, %c0_2] : memref<64x4xf32, #tpu.memory_space<vmem>>, vector<64x4xf32>
    %cst = arith.constant 0.000000e+00 : f32
    %2 = vector.broadcast %cst : f32 to vector<3x512xf32>
    %c0_3 = arith.constant 0 : index
    %c0_4 = arith.constant 0 : index
    %c0_5 = arith.constant 0 : index
    %3 = vector.load %arg3[%c0_3, %c0_4, %c0_5] : memref<4x3x192xf32, #tpu.memory_space<vmem>>, vector<1x3x192xf32>
    %4 = vector.shape_cast %3 : vector<1x3x192xf32> to vector<3x192xf32>
    %cst_6 = arith.constant dense<0.000000e+00> : vector<3x64xf32>
    %5 = tpu.matmul %4, %0, %cst_6 {dimension_numbers = #tpu.dot_dimension_numbers<[1], [0], [0], [1], [0, 0, 1, 1], [], []>} : vector<3x192xf32>, vector<192x64xf32>, vector<3x64xf32> -> vector<3x64xf32>
    %cst_7 = arith.constant dense<0.000000e+00> : vector<3x4xf32>
    %6 = tpu.matmul %5, %1, %cst_7 {dimension_numbers = #tpu.dot_dimension_numbers<[1], [0], [0], [1], [0, 0, 1, 1], [], []>} : vector<3x64xf32>, vector<64x4xf32>, vector<3x4xf32> -> vector<3x4xf32>
    %c0_8 = arith.constant 0 : index
    %c0_9 = arith.constant 0 : index
    %c0_10 = arith.constant 0 : index
    %7 = vector.load %arg4[%c0_8, %c0_9, %c0_10] : memref<4x4x512xf32, #tpu.memory_space<vmem>>, vector<1x4x512xf32>
    %8 = vector.shape_cast %7 : vector<1x4x512xf32> to vector<4x512xf32>
    %cst_11 = arith.constant dense<0.000000e+00> : vector<3x512xf32>
    %9 = tpu.matmul %6, %8, %cst_11 {dimension_numbers = #tpu.dot_dimension_numbers<[1], [0], [0], [1], [0, 0, 1, 1], [], []>} : vector<3x4xf32>, vector<4x512xf32>, vector<3x512xf32> -> vector<3x512xf32>
    %10 = arith.addf %2, %9 : vector<3x512xf32>
    %c1 = arith.constant 1 : index
    %c0_12 = arith.constant 0 : index
    %c0_13 = arith.constant 0 : index
    %11 = vector.load %arg3[%c1, %c0_12, %c0_13] : memref<4x3x192xf32, #tpu.memory_space<vmem>>, vector<1x3x192xf32>
    %12 = vector.shape_cast %11 : vector<1x3x192xf32> to vector<3x192xf32>
    %cst_14 = arith.constant dense<0.000000e+00> : vector<3x64xf32>
    %13 = tpu.matmul %12, %0, %cst_14 {dimension_numbers = #tpu.dot_dimension_numbers<[1], [0], [0], [1], [0, 0, 1, 1], [], []>} : vector<3x192xf32>, vector<192x64xf32>, vector<3x64xf32> -> vector<3x64xf32>
    %cst_15 = arith.constant dense<0.000000e+00> : vector<3x4xf32>
    %14 = tpu.matmul %13, %1, %cst_15 {dimension_numbers = #tpu.dot_dimension_numbers<[1], [0], [0], [1], [0, 0, 1, 1], [], []>} : vector<3x64xf32>, vector<64x4xf32>, vector<3x4xf32> -> vector<3x4xf32>
    %c1_16 = arith.constant 1 : index
    %c0_17 = arith.constant 0 : index
    %c0_18 = arith.constant 0 : index
    %15 = vector.load %arg4[%c1_16, %c0_17, %c0_18] : memref<4x4x512xf32, #tpu.memory_space<vmem>>, vector<1x4x512xf32>
    %16 = vector.shape_cast %15 : vector<1x4x512xf32> to vector<4x512xf32>
    %cst_19 = arith.constant dense<0.000000e+00> : vector<3x512xf32>
    %17 = tpu.matmul %14, %16, %cst_19 {dimension_numbers = #tpu.dot_dimension_numbers<[1], [0], [0], [1], [0, 0, 1, 1], [], []>} : vector<3x4xf32>, vector<4x512xf32>, vector<3x512xf32> -> vector<3x512xf32>
    %18 = arith.addf %10, %17 : vector<3x512xf32>
    %c2 = arith.constant 2 : index
    %c0_20 = arith.constant 0 : index
    %c0_21 = arith.constant 0 : index
    %19 = vector.load %arg3[%c2, %c0_20, %c0_21] : memref<4x3x192xf32, #tpu.memory_space<vmem>>, vector<1x3x192xf32>
    %20 = vector.shape_cast %19 : vector<1x3x192xf32> to vector<3x192xf32>
    %cst_22 = arith.constant dense<0.000000e+00> : vector<3x64xf32>
    %21 = tpu.matmul %20, %0, %cst_22 {dimension_numbers = #tpu.dot_dimension_numbers<[1], [0], [0], [1], [0, 0, 1, 1], [], []>} : vector<3x192xf32>, vector<192x64xf32>, vector<3x64xf32> -> vector<3x64xf32>
    %cst_23 = arith.constant dense<0.000000e+00> : vector<3x4xf32>
    %22 = tpu.matmul %21, %1, %cst_23 {dimension_numbers = #tpu.dot_dimension_numbers<[1], [0], [0], [1], [0, 0, 1, 1], [], []>} : vector<3x64xf32>, vector<64x4xf32>, vector<3x4xf32> -> vector<3x4xf32>
    %c2_24 = arith.constant 2 : index
    %c0_25 = arith.constant 0 : index
    %c0_26 = arith.constant 0 : index
    %23 = vector.load %arg4[%c2_24, %c0_25, %c0_26] : memref<4x4x512xf32, #tpu.memory_space<vmem>>, vector<1x4x512xf32>
    %24 = vector.shape_cast %23 : vector<1x4x512xf32> to vector<4x512xf32>
    %cst_27 = arith.constant dense<0.000000e+00> : vector<3x512xf32>
    %25 = tpu.matmul %22, %24, %cst_27 {dimension_numbers = #tpu.dot_dimension_numbers<[1], [0], [0], [1], [0, 0, 1, 1], [], []>} : vector<3x4xf32>, vector<4x512xf32>, vector<3x512xf32> -> vector<3x512xf32>
    %26 = arith.addf %18, %25 : vector<3x512xf32>
    %c3 = arith.constant 3 : index
    %c0_28 = arith.constant 0 : index
    %c0_29 = arith.constant 0 : index
    %27 = vector.load %arg3[%c3, %c0_28, %c0_29] : memref<4x3x192xf32, #tpu.memory_space<vmem>>, vector<1x3x192xf32>
    %28 = vector.shape_cast %27 : vector<1x3x192xf32> to vector<3x192xf32>
    %cst_30 = arith.constant dense<0.000000e+00> : vector<3x64xf32>
    %29 = tpu.matmul %28, %0, %cst_30 {dimension_numbers = #tpu.dot_dimension_numbers<[1], [0], [0], [1], [0, 0, 1, 1], [], []>} : vector<3x192xf32>, vector<192x64xf32>, vector<3x64xf32> -> vector<3x64xf32>
    %cst_31 = arith.constant dense<0.000000e+00> : vector<3x4xf32>
    %30 = tpu.matmul %29, %1, %cst_31 {dimension_numbers = #tpu.dot_dimension_numbers<[1], [0], [0], [1], [0, 0, 1, 1], [], []>} : vector<3x64xf32>, vector<64x4xf32>, vector<3x4xf32> -> vector<3x4xf32>
    %c3_32 = arith.constant 3 : index
    %c0_33 = arith.constant 0 : index
    %c0_34 = arith.constant 0 : index
    %31 = vector.load %arg4[%c3_32, %c0_33, %c0_34] : memref<4x4x512xf32, #tpu.memory_space<vmem>>, vector<1x4x512xf32>
    %32 = vector.shape_cast %31 : vector<1x4x512xf32> to vector<4x512xf32>
    %cst_35 = arith.constant dense<0.000000e+00> : vector<3x512xf32>
    %33 = tpu.matmul %30, %32, %cst_35 {dimension_numbers = #tpu.dot_dimension_numbers<[1], [0], [0], [1], [0, 0, 1, 1], [], []>} : vector<3x4xf32>, vector<4x512xf32>, vector<3x512xf32> -> vector<3x512xf32>
    %34 = arith.addf %26, %33 : vector<3x512xf32>
    %c0_36 = arith.constant 0 : index
    %c0_37 = arith.constant 0 : index
    %35 = vector.load %arg5[%c0_36, %c0_37] : memref<3x512xf32, #tpu.memory_space<vmem>>, vector<3x512xf32>
    %36 = arith.mulf %34, %35 : vector<3x512xf32>
    %cst_38 = arith.constant dense<0.000000e+00> : vector<512xf32>
    %37 = vector.multi_reduction <add>, %36, %cst_38 [0] : vector<3x512xf32> to vector<512xf32>
    %38 = vector.shape_cast %37 : vector<512xf32> to vector<1x512xf32>
    %c0_39 = arith.constant 0 : index
    %c0_40 = arith.constant 0 : index
    %39 = vector.load %arg6[%c0_39, %c0_40] : memref<1x512xf32, #tpu.memory_space<vmem>>, vector<1x512xf32>
    %40 = arith.subf %38, %39 : vector<1x512xf32>
    %c0_41 = arith.constant 0 : index
    %c0_42 = arith.constant 0 : index
    %41 = vector.load %arg7[%c0_41, %c0_42] : memref<512x8xf32, #tpu.memory_space<vmem>>, vector<512x8xf32>
    %cst_43 = arith.constant dense<0.000000e+00> : vector<1x8xf32>
    %42 = tpu.matmul %40, %41, %cst_43 {dimension_numbers = #tpu.dot_dimension_numbers<[1], [0], [0], [1], [0, 0, 1, 1], [], []>} : vector<1x512xf32>, vector<512x8xf32>, vector<1x8xf32> -> vector<1x8xf32>
    %c0_44 = arith.constant 0 : index
    %c0_45 = arith.constant 0 : index
    %43 = vector.load %arg8[%c0_44, %c0_45] : memref<8x512xf32, #tpu.memory_space<vmem>>, vector<8x512xf32>
    %cst_46 = arith.constant dense<0.000000e+00> : vector<1x512xf32>
    %44 = tpu.matmul %42, %43, %cst_46 {dimension_numbers = #tpu.dot_dimension_numbers<[1], [0], [0], [1], [0, 0, 1, 1], [], []>} : vector<1x8xf32>, vector<8x512xf32>, vector<1x512xf32> -> vector<1x512xf32>
    %45 = arith.subf %40, %44 : vector<1x512xf32>
    %46 = arith.mulf %45, %45 : vector<1x512xf32>
    %c0_47 = arith.constant 0 : index
    %c0_48 = arith.constant 0 : index
    %47 = vector.load %arg9[%c0_47, %c0_48] : memref<4x512xf32, #tpu.memory_space<vmem>>, vector<4x512xf32>
    %48 = vector.broadcast %46 : vector<1x512xf32> to vector<4x512xf32>
    %49 = arith.mulf %47, %48 : vector<4x512xf32>
    %c0_49 = arith.constant 0 : index
    %c0_50 = arith.constant 0 : index
    %50 = vector.load %arg10[%c0_49, %c0_50] : memref<512x4xf32, #tpu.memory_space<vmem>>, vector<512x4xf32>
    %cst_51 = arith.constant dense<0.000000e+00> : vector<4x4xf32>
    %51 = tpu.matmul %49, %50, %cst_51 {dimension_numbers = #tpu.dot_dimension_numbers<[1], [0], [0], [1], [0, 0, 1, 1], [], []>} : vector<4x512xf32>, vector<512x4xf32>, vector<4x4xf32> -> vector<4x4xf32>
    %c0_52 = arith.constant 0 : index
    %c0_53 = arith.constant 0 : index
    %52 = vector.load %arg11[%c0_52, %c0_53] : memref<64x4xf32, #tpu.memory_space<vmem>>, vector<64x4xf32>
    %cst_54 = arith.constant dense<0.000000e+00> : vector<64x4xf32>
    %53 = tpu.matmul %52, %51, %cst_54 {dimension_numbers = #tpu.dot_dimension_numbers<[1], [0], [0], [1], [0, 0, 1, 1], [], []>} : vector<64x4xf32>, vector<4x4xf32>, vector<64x4xf32> -> vector<64x4xf32>
    %c0_55 = arith.constant 0 : index
    %c0_56 = arith.constant 0 : index
    %54 = vector.load %arg12[%c0_55, %c0_56] : memref<4x64xf32, #tpu.memory_space<vmem>>, vector<4x64xf32>
    %cst_57 = arith.constant dense<0.000000e+00> : vector<64x64xf32>
    %55 = tpu.matmul %53, %54, %cst_57 {dimension_numbers = #tpu.dot_dimension_numbers<[1], [0], [0], [1], [0, 0, 1, 1], [], []>} : vector<64x4xf32>, vector<4x64xf32>, vector<64x64xf32> -> vector<64x64xf32>
    %c0_58 = arith.constant 0 : index
    %c0_59 = arith.constant 0 : index
    %56 = vector.load %arg13[%c0_58, %c0_59] : memref<64x64xf32, #tpu.memory_space<vmem>>, vector<64x64xf32>
    tpu.vector_store %arg13[%c0_58, %c0_59], %55 {strides = array<i32>} : memref<64x64xf32, #tpu.memory_space<vmem>>, vector<64x64xf32>,
    %cst_60 = arith.constant dense<0.000000e+00> : vector<4xf32>
    %57 = vector.multi_reduction <add>, %51, %cst_60 [1] : vector<4x4xf32> to vector<4xf32>
    %58 = vector.shape_cast %57 : vector<4xf32> to vector<4x1xf32>
    %cst_61 = arith.constant dense<0.000000e+00> : vector<1xf32>
    %59 = vector.multi_reduction <add>, %58, %cst_61 [0] : vector<4x1xf32> to vector<1xf32>
    %60 = vector.shape_cast %59 : vector<1xf32> to vector<1x1xf32>
    %61 = vector.shape_cast %60 : vector<1x1xf32> to vector<1x1xf32>
    %62 = vector.broadcast %61 : vector<1x1xf32> to vector<8x128xf32>
    %c0_62 = arith.constant 0 : index
    %c0_63 = arith.constant 0 : index
    %63 = vector.load %arg14[%c0_62, %c0_63] : memref<8x128xf32, #tpu.memory_space<vmem>>, vector<8x128xf32>
    tpu.vector_store %arg14[%c0_62, %c0_63], %62 {strides = array<i32>} : memref<8x128xf32, #tpu.memory_space<vmem>>, vector<8x128xf32>,
    return
  }
  func.func @transform_0(%arg0: i32) -> (i32, i32) {
    %c0_i32 = arith.constant 0 : i32
    %c0_i32_0 = arith.constant 0 : i32
    return %arg0, %c0_i32 : i32, i32
  }
  func.func @transform_1(%arg0: i32) -> (i32, i32) {
    %c0_i32 = arith.constant 0 : i32
    %c0_i32_0 = arith.constant 0 : i32
    %c0_i32_1 = arith.constant 0 : i32
    return %c0_i32, %c0_i32_0 : i32, i32
  }
  func.func @transform_2(%arg0: i32) -> (i32, i32, i32) {
    %c0_i32 = arith.constant 0 : i32
    %c0_i32_0 = arith.constant 0 : i32
    %c0_i32_1 = arith.constant 0 : i32
    %c0_i32_2 = arith.constant 0 : i32
    return %c0_i32, %c0_i32_0, %c0_i32_1 : i32, i32, i32
  }
  func.func @transform_3(%arg0: i32) -> (i32, i32, i32) {
    %c0_i32 = arith.constant 0 : i32
    %c0_i32_0 = arith.constant 0 : i32
    %c0_i32_1 = arith.constant 0 : i32
    %c0_i32_2 = arith.constant 0 : i32
    return %c0_i32, %c0_i32_0, %c0_i32_1 : i32, i32, i32
  }
  func.func @transform_4(%arg0: i32) -> (i32, i32) {
    %c0_i32 = arith.constant 0 : i32
    %c0_i32_0 = arith.constant 0 : i32
    %c0_i32_1 = arith.constant 0 : i32
    return %c0_i32, %c0_i32_0 : i32, i32
  }
  func.func @transform_5(%arg0: i32) -> (i32, i32) {
    %c0_i32 = arith.constant 0 : i32
    %c0_i32_0 = arith.constant 0 : i32
    %c0_i32_1 = arith.constant 0 : i32
    return %c0_i32, %c0_i32_0 : i32, i32
  }
  func.func @transform_6(%arg0: i32) -> (i32, i32) {
    %c0_i32 = arith.constant 0 : i32
    %c0_i32_0 = arith.constant 0 : i32
    %c0_i32_1 = arith.constant 0 : i32
    return %c0_i32, %c0_i32_0 : i32, i32
  }
  func.func @transform_7(%arg0: i32) -> (i32, i32) {
    %c0_i32 = arith.constant 0 : i32
    %c0_i32_0 = arith.constant 0 : i32
    %c0_i32_1 = arith.constant 0 : i32
    return %c0_i32, %c0_i32_0 : i32, i32
  }
  func.func @transform_8(%arg0: i32) -> (i32, i32) {
    %c0_i32 = arith.constant 0 : i32
    %c0_i32_0 = arith.constant 0 : i32
    %c0_i32_1 = arith.constant 0 : i32
    return %c0_i32, %c0_i32_0 : i32, i32
  }
  func.func @transform_9(%arg0: i32) -> (i32, i32) {
    %c0_i32 = arith.constant 0 : i32
    %c0_i32_0 = arith.constant 0 : i32
    %c0_i32_1 = arith.constant 0 : i32
    return %c0_i32, %c0_i32_0 : i32, i32
  }
  func.func @transform_10(%arg0: i32) -> (i32, i32) {
    %c0_i32 = arith.constant 0 : i32
    %c0_i32_0 = arith.constant 0 : i32
    %c0_i32_1 = arith.constant 0 : i32
    return %c0_i32, %c0_i32_0 : i32, i32
  }
  func.func @transform_11(%arg0: i32) -> (i32, i32) {
    %c0_i32 = arith.constant 0 : i32
    %c0_i32_0 = arith.constant 0 : i32
    %c0_i32_1 = arith.constant 0 : i32
    return %c0_i32, %c0_i32_0 : i32, i32
  }
  func.func @transform_12(%arg0: i32) -> (i32, i32) {
    %c0_i32 = arith.constant 0 : i32
    %c0_i32_0 = arith.constant 0 : i32
    return %arg0, %c0_i32 : i32, i32
  }
  func.func @transform_13(%arg0: i32) -> (i32, i32) {
    %c0_i32 = arith.constant 0 : i32
    %c0_i32_0 = arith.constant 0 : i32
    return %arg0, %c0_i32 : i32, i32
  }
}

</mosaic_0001>

<bundles_post_ra>
// kernel: dfm_forward.1
= control target key start
LH: loop header
LB: loop body
LE: loop exit
PB: predicated region body
PF: predicated region fallthrough
CT: control target
= control target key end

     0   :  { %s4456_s0 = inlined_call_operand.vmem [shape: f32[384,64], index: 0, kind: input, shape index: {}]   ;;  %s4457_s1 = inlined_call_operand.vmem [shape: f32[64,4], index: 1, kind: input, shape index: {}]   ;;  %s4458_s2 = inlined_call_operand.vmem [shape: f32[4,3,192], index: 2, kind: input, shape index: {}]   ;;  %s4459_s3 = inlined_call_operand.vmem [shape: f32[4,4,512], index: 3, kind: input, shape index: {}]   ;;  %s4460_s4 = inlined_call_operand.vmem [shape: f32[3,512], index: 4, kind: input, shape index: {}]   ;;  %s4461_s5 = inlined_call_operand.vmem [shape: f32[1,512], index: 5, kind: input, shape index: {}]   ;;  %s4462_s6 = inlined_call_operand.vmem [shape: f32[512,8], index: 6, kind: input, shape index: {}]   ;;  %s4463_s7 = inlined_call_operand.vmem [shape: f32[8,512], index: 7, kind: input, shape index: {}]   ;;  %s4464_s8 = inlined_call_operand.vmem [shape: f32[4,512], index: 8, kind: input, shape index: {}]   ;;  %s4465_s9 = inlined_call_operand.vmem [shape: f32[512,4], index: 9, kind: input, shape index: {}]   ;;  %s4466_s10 = inlined_call_operand.vmem [shape: f32[64,4], index: 10, kind: input, shape index: {}]   ;;  %s4467_s11 = inlined_call_operand.vmem [shape: f32[4,64], index: 11, kind: input, shape index: {}]   ;;  %s4468_s12 = inlined_call_operand.hbm [shape: f32[128,64], index: 12, kind: output, shape index: {0}]   ;;  %s4469_s13 = inlined_call_operand.vmem [shape: f32[16,128], index: 13, kind: output, shape index: {1}]  }
   0x1   :  { %4470 = sst [smem:[#allocation6_spill]] %s4456_s0 }
   0x2   :  { %4471 = sst [smem:[#allocation7_spill]] %s4457_s1 }
   0x3   :  { %19 = vsyncpa [#allocation3], 0 }
   0x4   :  { %21 = vsyncpa [#allocation3 + $0x1], 0  ;;  %s3363_s25 = smov 0   ;;  %s3365_s26 = smov 0  }
   0x5   :  { %s3367_s27 = smov 0   ;;  %s3369_s28 = smov 0  }
   0x6 LB: > { %s3384_s29 = sadd.s32 4294967295, %s3286_s28   ;;  %s2797_s30 = sadd.s32 4294967294, %s3286_s28   ;;  %s3286_s28 = sphi %s3369_s28, %s4481_s28   ;;  %s3282_s27 = sphi %s3367_s27, %s4480_s27   ;;  %s3278_s26 = sphi %s3365_s26, %s4479_s26   ;;  %s3274_s25 = sphi %s3363_s25, %s4478_s25  }
   0x7   : > { %s3388_s14 = sadd.s32 1, %s3286_s28   ;;  %s291_s15 = sadd.s32 1, %s3282_s27 }
   0x8   : > { %s288_s16 = ssub.s32 %s3286_s28, %s3388_s14  ;;  %p301_p0 = scmp.ne.s32.totalorder %s3282_s27, %s3278_s26 }
   0x9   : > { %p289_p1 = scmp.eq.s32.totalorder %s288_s16, 0  ;;  %p302_p2 = scmp.eq.s32.totalorder %s3384_s29, 1 }
   0xa   : > { %p307_p3 = scmp.ne.s32.totalorder %s3278_s26, %s3274_s25  ;;  %p308_p4 = scmp.eq.s32.totalorder %s2797_s30, 1 }
   0xb   : > { %s3399_s17 = scalar_select %p289_p1, %s3282_s27, %s291_s15  }
   0xc   : > { %p3401_p5 = por %p302_p2, %p301_p0  ;;  %p3405_p6 = por %p308_p4, %p307_p3 }
   0xd   : > { %4472 = sst [smem:[#allocation5_spill]] %s3399_s17  ;;  %p2800_p7 = scmp.ge.s32.totalorder %s3286_s28, 1 }
   0xe   : > { %p394_p8 = scmp.lt.s32.totalorder %s3286_s28, 3 }
  0x10   : > { %p395_p9 = pnand %p2800_p7, %p394_p8 }
  0x11   : > { %s442_s20 = smul.u32 (!%p395_p9), 24, %s3384_s29  ;;  %s4475_s1 = sld [smem:[#allocation7_spill]] (!%p395_p9) }
  0x12   : > { %398 = sbr.rel (%p395_p9) target bundleno = 2822 (0xb06), region = 68  ;;  %s4476_s0 = sld [smem:[#allocation6_spill]] (!%p395_p9) }
  0x13   : > { %p443_p10 = scmp.lt.s32.totalorder (!%p395_p9), %s442_s20, 47  ;;  %p449_p11 = scmp.lt.s32.totalorder (!%p395_p9), %s3384_s29, 1 }
  0x14   : > { %s433_s16 = sand.u32 (!%p395_p9), 1, %s3278_s26   ;;  %s2870_s22 = sshll.u32 (!%p395_p9), %s3384_s29, 10 }
  0x15   : > { %s2801_s21 = sshll.u32 (!%p395_p9), %s433_s16, 6 }
  0x17   : > { %v3415_v0 = vld [vmem:[%s4458_s2] sm:$0x77]  ;;  %vm488_vm0 = vcmask 523264   ;;  %v3420_v1 = vld [vmem:[%s4475_s1 + $0x38] sm:$0xff]  ;;  %v3288_v2 = vmov 0.0   ;;  %v3429_v4 = vld [vmem:[%s4475_s1 + $0x30] sm:$0xff] }
  0x18   : > { %491 = vmatprep.subr.mxu0 %v3288_v2  ;;  %v487_v3 = vcombine.high %v3415_v0, %v3415_v0  ;;  %3065 = vmatprep.subr.mxu1 %v3288_v2  ;;  %v3437_v5 = vld [vmem:[%s4475_s1 + $0x28] sm:$0xff]  ;;  %s4483_s20 = smov (!%p443_p10, %s442_s20), 47  ;;  %v3444_v6 = vld [vmem:[%s4475_s1 + $0x20] sm:$0xff]  ;;  %v3456_v7 = vld [vmem:[%s4475_s1 + $0x18] sm:$0xff]  ;;  %vm3289_vm1 = vmmov 0   ;;  %vm796_vm2 = vcmask 1043456  }
  0x19   : > { %3066 = vmatpush3.msra.mxu1 %v3420_v1  ;;  %s2802_s24 = sshll.u32 %s4483_s20, 3  ;;  %v3470_v10 = vld [vmem:[%s4475_s1 + $0x10] sm:$0xff]  ;;  %v3482_v12 = vld [vmem:[%s4475_s1 + $0x8] sm:$0xff]  ;;  %v3494_v14 = vld [vmem:[%s4475_s1] sm:$0xff]  ;;  %3081 = vmatprep.mubr.msk.f32.mxu1 %vm3289_vm1, %v3288_v2  ;;  %vm792_vm3 = vcmask 31744   ;;  %vm1742_vm4 = vcmask 1042432  }
  0x1a   : > { %2804 = vmatprep.mubr.msk.f32.mxu0 %vm488_vm0, %v487_v3  ;;  %3067 = vmatprep.subr.mxu1 %v3288_v2  ;;  %s3450_s17 = scalar_lea.vmem %s4476_s0, %s2802_s24  ;;  %v2806_v35 = vld [vmem:[%s4458_s2 + $0x8] sm:$0x77]  ;;  %v2809_v39 = vld [vmem:[%s4459_s3 + $0x10] sm:$0xff]  ;;  %v2810_v40 = vld [vmem:[%s4459_s3 + $0x18] sm:$0xff]  ;;  %vm2005_vm5 = vcmask 64512   ;;  %vm2678_vm6 = vcmask 27648   ;;  %s4410_s0 = scalar_lea.hbm %s4468_s12, %s2870_s22 }
  0x1b   : > { %3068 = vmatpush3.msra.mxu1 %v3429_v4  ;;  %v3459_v8 = vld [vmem:[%s3450_s17 + $0x78] sm:$0xff]  ;;  %v3462_v9 = vld [vmem:[%s3450_s17 + $0x70] sm:$0xff]  ;;  %v3474_v11 = vld [vmem:[%s3450_s17 + $0x68] sm:$0xff]  ;;  %v639_v36 = vcombine.high %v2806_v35, %v2806_v35  ;;  %v790_v41 = vcombine.high %v2809_v39, %v2809_v39  ;;  %v791_v42 = vcombine.high %v2810_v40, %v2810_v40  ;;  %s450_s24 = scalar_select %p449_p11, %s3384_s29, 1 }
  0x1c   : > { %3069 = vmatprep.subr.mxu1 %v3288_v2  ;;  %492 = vmatpush1.msra.mxu0 %v3459_v8  ;;  %v3486_v13 = vld [vmem:[%s3450_s17 + $0x60] sm:$0xff]  ;;  %v3498_v15 = vld [vmem:[%s3450_s17 + $0x58] sm:$0xff]  ;;  %v3505_v16 = vld [vmem:[%s3450_s17 + $0x50] sm:$0xff]  ;;  %s435_s20 = scalar_lea.vmem [#allocation2], %s2801_s21  ;;  %s4416_s29 = scalar_lea.sflag [#allocation3], %s433_s16 }
  0x1d   : > { %3070 = vmatpush3.msra.mxu1 %v3437_v5  ;;  %493 = vmatprep.subr.mxu0 %v3288_v2  ;;  %v3512_v17 = vld [vmem:[%s3450_s17 + $0x48] sm:$0xff]  ;;  %v3517_v18 = vld [vmem:[%s3450_s17 + $0x40] sm:$0xff]  ;;  %v3522_v19 = vld [vmem:[%s3450_s17 + $0x38] sm:$0xff]  ;;  %s2803_s30 = sshll.u32 %s450_s24, 3  ;;  %s2708_s23 = sshll.u32 %s435_s20, 4  ;;  %s4412_s23 = int_to_ptr.vmem [resolvable:$true] %s2708_s23 }
  0x1e   : > { %3071 = vmatprep.subr.mxu1 %v3288_v2  ;;  %494 = vmatpush1.msra.mxu0 %v3462_v9  ;;  %v3527_v20 = vld [vmem:[%s3450_s17 + $0x30] sm:$0xff]  ;;  %v3532_v21 = vld [vmem:[%s3450_s17 + $0x28] sm:$0xff]  ;;  %v3537_v22 = vld [vmem:[%s3450_s17 + $0x20] sm:$0xff]  ;;  %s3226_s15 = scalar_lea.vmem %s4412_s23, 1024 }
  0x1f   : > { %3072 = vmatpush3.msra.mxu1 %v3444_v6  ;;  %495 = vmatprep.subr.mxu0 %v3288_v2  ;;  %v3542_v23 = vld [vmem:[%s3450_s17 + $0x18] sm:$0xff]  ;;  %v3547_v24 = vld [vmem:[%s3450_s17 + $0x10] sm:$0xff]  ;;  %v3552_v25 = vld [vmem:[%s3450_s17 + $0x8] sm:$0xff]  ;;  %p3227_p12 = scmp.ne.s32.totalorder %s4412_s23, %s3226_s15 }
  0x20   : > { %3073 = vmatprep.subr.mxu1 %v3288_v2  ;;  %496 = vmatpush1.msra.mxu0 %v3474_v11  ;;  %v3557_v26 = vld [vmem:[%s3450_s17] sm:$0xff]  ;;  %v3562_v27 = vld [vmem:[%s3450_s17 + $0xb8] sm:$0xff]  ;;  %v3567_v28 = vld [vmem:[%s3450_s17 + $0xb0] sm:$0xff] }
  0x21   : > { %3074 = vmatpush3.msra.mxu1 %v3456_v7  ;;  %497 = vmatprep.subr.mxu0 %v3288_v2  ;;  %v3572_v29 = vld [vmem:[%s3450_s17 + $0xa8] sm:$0xff]  ;;  %v3577_v30 = vld [vmem:[%s3450_s17 + $0xa0] sm:$0xff]  ;;  %v3582_v31 = vld [vmem:[%s3450_s17 + $0x98] sm:$0xff]  ;;  %p3228_p13 = pnand %p3227_p12, %p3401_p5 }
  0x22   : > { %3075 = vmatprep.subr.mxu1 %v3288_v2  ;;  %498 = vmatpush1.msra.mxu0 %v3486_v13  ;;  %v3587_v32 = vld [vmem:[%s3450_s17 + $0x90] sm:$0xff]  ;;  %v3592_v33 = vld [vmem:[%s3450_s17 + $0x88] sm:$0xff]  ;;  %v3597_v34 = vld [vmem:[%s3450_s17 + $0x80] sm:$0xff]  ;;  %s452_s17 = scalar_lea.vmem %s4469_s13, %s2803_s30 }
  0x23   : > { %3076 = vmatpush3.msra.mxu1 %v3470_v10  ;;  %499 = vmatprep.subr.mxu0 %v3288_v2  ;;  %v634_v47 = vld [vmem:[%s4459_s3] sm:$0xff]  ;;  %v635_v49 = vld [vmem:[%s4459_s3 + $0x8] sm:$0xff]  ;;  %v3699_v51 = vld [vmem:[%s4458_s2 + $0x10] sm:$0x77]  ;;  %p3229_p0 = pneg %p3228_p13 }
  0x24   : > { %3077 = vmatprep.subr.mxu1 %v3288_v2  ;;  %500 = vmatpush1.msra.mxu0 %v3498_v15  ;;  %v949_v48 = vcombine.high %v634_v47, %v634_v47  ;;  %v950_v50 = vcombine.high %v635_v49, %v635_v49  ;;  %v1107_v54 = vcombine.high %v3699_v51, %v3699_v51  ;;  %v2826_v55 = vld [vmem:[%s4459_s3 + $0x20] sm:$0xff] }
  0x25   : > { %3078 = vmatpush3.msra.mxu1 %v3482_v12  ;;  %501 = vmatprep.subr.mxu0 %v3288_v2  ;;  %v1258_v56 = vcombine.high %v2826_v55, %v2826_v55 }
  0x26   : > { %3079 = vmatprep.subr.mxu1 %v3288_v2  ;;  %502 = vmatpush1.msra.mxu0 %v3505_v16 }
  0x27   : > { %3080 = vmatpush3.msra.mxu1 %v3494_v14  ;;  %503 = vmatprep.subr.mxu0 %v3288_v2 }
  0x28   : > { %642 = vmatprep.subr.mxu1 %v3288_v2  ;;  %504 = vmatpush1.msra.mxu0 %v3512_v17 }
  0x29   : > { %505 = vmatprep.subr.mxu0 %v3288_v2 }
  0x2a   : > { %506 = vmatpush1.msra.mxu0 %v3517_v18 }
  0x2b   : > { %507 = vmatprep.subr.mxu0 %v3288_v2 }
  0x2c   : > { %508 = vmatpush1.msra.mxu0 %v3522_v19 }
  0x2d   : > { %509 = vmatprep.subr.mxu0 %v3288_v2 }
  0x2e   : > { %510 = vmatpush1.msra.mxu0 %v3527_v20 }
  0x2f   : > { %511 = vmatprep.subr.mxu0 %v3288_v2 }
  0x30   : > { %512 = vmatpush1.msra.mxu0 %v3532_v21 }
  0x31   : > { %513 = vmatprep.subr.mxu0 %v3288_v2 }
  0x32   : > { %514 = vmatpush1.msra.mxu0 %v3537_v22 }
  0x33   : > { %515 = vmatprep.subr.mxu0 %v3288_v2 }
  0x34   : > { %516 = vmatpush1.msra.mxu0 %v3542_v23 }
  0x35   : > { %517 = vmatprep.subr.mxu0 %v3288_v2 }
  0x36   : > { %518 = vmatpush1.msra.mxu0 %v3547_v24 }
  0x37   : > { %519 = vmatprep.subr.mxu0 %v3288_v2 }
  0x38   : > { %520 = vmatpush1.msra.mxu0 %v3552_v25 }
  0x39   : > { %521 = vmatprep.subr.mxu0 %v3288_v2 }
  0x3a   : > { %522 = vmatpush1.msra.mxu0 %v3557_v26 }
  0x3b   : > { %539 = vmatprep.subr.mxu0 %v3288_v2 }
  0x3c   : > { %540 = vmatpush2.msra.mxu0 %v3562_v27 }
  0x3d   : > { %541 = vmatprep.subr.mxu0 %v3288_v2 }
  0x3e   : > { %542 = vmatpush2.msra.mxu0 %v3567_v28 }
  0x3f   : > { %543 = vmatprep.subr.mxu0 %v3288_v2 }
  0x40   : > { %544 = vmatpush2.msra.mxu0 %v3572_v29 }
  0x41   : > { %545 = vmatprep.subr.mxu0 %v3288_v2 }
  0x42   : > { %546 = vmatpush2.msra.mxu0 %v3577_v30 }
  0x43   : > { %547 = vmatprep.subr.mxu0 %v3288_v2 }
  0x44   : > { %548 = vmatpush2.msra.mxu0 %v3582_v31 }
  0x45   : > { %549 = vmatprep.subr.mxu0 %v3288_v2 }
  0x46   : > { %550 = vmatpush2.msra.mxu0 %v3587_v32 }
  0x47   : > { %551 = vmatprep.subr.mxu0 %v3288_v2 }
  0x48   : > { %552 = vmatpush2.msra.mxu0 %v3592_v33 }
  0x49   : > { %553 = vmatprep.subr.mxu0 %v3288_v2 }
  0x4a   : > { %554 = vmatpush2.msra.mxu0 %v3597_v34 }
  0x4b   : > { %556 = vmatmul.mubr.f32.vlgmr.msra.gmra.mxu0 %v3415_v0  ;;  %3084 = vmatprep.subr.mxu0 %v3288_v2 }
  0x4c   : > { %3085 = vmatpush3.msra.mxu0 %v3420_v1  ;;  %3100 = vmatprep.mubr.msk.f32.mxu0 %vm3289_vm1, %v3288_v2 }
  0x4d   : > { %3086 = vmatprep.subr.mxu0 %v3288_v2 }
  0x4e   : > { %3087 = vmatpush3.msra.mxu0 %v3429_v4 }
  0x4f   : > { %3088 = vmatprep.subr.mxu0 %v3288_v2 }
  0x50   : > { %3089 = vmatpush3.msra.mxu0 %v3437_v5 }
  0x51   : > { %3090 = vmatprep.subr.mxu0 %v3288_v2 }
  0x52   : > { %3091 = vmatpush3.msra.mxu0 %v3444_v6 }
  0x53   : > { %3092 = vmatprep.subr.mxu0 %v3288_v2 }
  0x54   : > { %3093 = vmatpush3.msra.mxu0 %v3456_v7 }
  0x55   : > { %3094 = vmatprep.subr.mxu0 %v3288_v2 }
  0x56   : > { %3095 = vmatpush3.msra.mxu0 %v3470_v10 }
  0x57   : > { %3096 = vmatprep.subr.mxu0 %v3288_v2 }
  0x58   : > { %3097 = vmatpush3.msra.mxu0 %v3482_v12 }
  0x59   : > { %3098 = vmatprep.subr.mxu0 %v3288_v2 }
  0x5a   : > { %3099 = vmatpush3.msra.mxu0 %v3494_v14 }
  0x5b   : > { %2811 = vmatprep.subr.msk.mxu0 %vm796_vm2, %v790_v41  ;;  %v1825_v41 = vld [vmem:[%s4462_s6 + $0xe0] sm:$0xff] }
 0x10b   : > { %v557_v37 = vpop.f32.mrf.mxu0 }
 0x10c   : > { %3082 = vmatmul.mubr.msk.f32.vlgmr.msra.gmra.mxu1 %vm488_vm0, %v557_v37  ;;  %v1827_v37 = vld [vmem:[%s4462_s6 + $0xf0] sm:$0xff] }
 0x10d   : > { %643 = vmatpush1.msra.mxu1 %v3459_v8  ;;  %v559_v38 = vpop.f32.mrf.mxu0  ;;  %2807 = vmatprep.mubr.msk.f32.mxu1 %vm488_vm0, %v639_v36 }
 0x10e   : > { %644 = vmatprep.subr.mxu1 %v3288_v2  ;;  %v1811_v38 = vld [vmem:[%s4462_s6 + $0x70] sm:$0xff] }
 0x10f   : > { %645 = vmatpush1.msra.mxu1 %v3462_v9 }
 0x110   : > { %646 = vmatprep.subr.mxu1 %v3288_v2 }
 0x111   : > { %647 = vmatpush1.msra.mxu1 %v3474_v11 }
 0x112   : > { %648 = vmatprep.subr.mxu1 %v3288_v2 }
 0x113   : > { %649 = vmatpush1.msra.mxu1 %v3486_v13 }
 0x114   : > { %650 = vmatprep.subr.mxu1 %v3288_v2 }
 0x115   : > { %651 = vmatpush1.msra.mxu1 %v3498_v15 }
 0x116   : > { %652 = vmatprep.subr.mxu1 %v3288_v2 }
 0x117   : > { %653 = vmatpush1.msra.mxu1 %v3505_v16 }
 0x118   : > { %654 = vmatprep.subr.mxu1 %v3288_v2 }
 0x119   : > { %655 = vmatpush1.msra.mxu1 %v3512_v17 }
 0x11a   : > { %656 = vmatprep.subr.mxu1 %v3288_v2 }
 0x11b   : > { %657 = vmatpush1.msra.mxu1 %v3517_v18 }
 0x11c   : > { %658 = vmatprep.subr.mxu1 %v3288_v2 }
 0x11d   : > { %659 = vmatpush1.msra.mxu1 %v3522_v19 }
 0x11e   : > { %660 = vmatprep.subr.mxu1 %v3288_v2 }
 0x11f   : > { %661 = vmatpush1.msra.mxu1 %v3527_v20 }
 0x120   : > { %662 = vmatprep.subr.mxu1 %v3288_v2 }
 0x121   : > { %663 = vmatpush1.msra.mxu1 %v3532_v21 }
 0x122   : > { %664 = vmatprep.subr.mxu1 %v3288_v2 }
 0x123   : > { %665 = vmatpush1.msra.mxu1 %v3537_v22 }
 0x124   : > { %666 = vmatprep.subr.mxu1 %v3288_v2 }
 0x125   : > { %667 = vmatpush1.msra.mxu1 %v3542_v23 }
 0x126   : > { %668 = vmatprep.subr.mxu1 %v3288_v2 }
 0x127   : > { %669 = vmatpush1.msra.mxu1 %v3547_v24 }
 0x128   : > { %670 = vmatprep.subr.mxu1 %v3288_v2 }
 0x129   : > { %671 = vmatpush1.msra.mxu1 %v3552_v25 }
 0x12a   : > { %672 = vmatprep.subr.mxu1 %v3288_v2 }
 0x12b   : > { %673 = vmatpush1.msra.mxu1 %v3557_v26 }
 0x12c   : > { %690 = vmatprep.subr.mxu1 %v3288_v2 }
 0x12d   : > { %691 = vmatpush2.msra.mxu1 %v3562_v27 }
 0x12e   : > { %692 = vmatprep.subr.mxu1 %v3288_v2 }
 0x12f   : > { %693 = vmatpush2.msra.mxu1 %v3567_v28 }
 0x130   : > { %694 = vmatprep.subr.mxu1 %v3288_v2 }
 0x131   : > { %695 = vmatpush2.msra.mxu1 %v3572_v29 }
 0x132   : > { %696 = vmatprep.subr.mxu1 %v3288_v2 }
 0x133   : > { %697 = vmatpush2.msra.mxu1 %v3577_v30 }
 0x134   : > { %698 = vmatprep.subr.mxu1 %v3288_v2 }
 0x135   : > { %699 = vmatpush2.msra.mxu1 %v3582_v31 }
 0x136   : > { %700 = vmatprep.subr.mxu1 %v3288_v2 }
 0x137   : > { %701 = vmatpush2.msra.mxu1 %v3587_v32 }
 0x138   : > { %702 = vmatprep.subr.mxu1 %v3288_v2 }
 0x139   : > { %703 = vmatpush2.msra.mxu1 %v3592_v33 }
 0x13a   : > { %704 = vmatprep.subr.mxu1 %v3288_v2 }
 0x13b   : > { %705 = vmatpush2.msra.mxu1 %v3597_v34 }
 0x13c   : > { %707 = vmatmul.mubr.f32.vlgmr.msra.gmra.mxu1 %v2806_v35  ;;  %2814 = vmatprep.subr.msk.mxu1 %vm796_vm2, %v791_v42  ;;  %v1809_v42 = vld [vmem:[%s4462_s6 + $0x60] sm:$0xff] }
 0x13d   : > { %940 = vmatprep.mubr.f32.mxu1 %v3288_v2  ;;  %2815 = vmatpush1.msk.msra.mxu1 %vm796_vm2, %v2810_v40  ;;  %v1810_v40 = vld [vmem:[%s4462_s6 + $0x68] sm:$0xff] }
 0x13e   : > { %2820 = vmatprep.subr.msk.mxu1 %vm796_vm2, %v950_v50  ;;  %v1822_v50 = vld [vmem:[%s4462_s6 + $0xc8] sm:$0xff] }
 0x1cc   : > { %v630_v43 = vpop.f32.mrf.mxu1 }
 0x1ce   : > { %v3083_v44 = vpop.f32.mrf.mxu1 }
 0x1cf   : > { %v1808_v44 = vld [vmem:[%s4462_s6 + $0x58] sm:$0xff] }
 0x1fc   : > { %v708_v45 = vpop.f32.mrf.mxu1 }
 0x1fd   : > { %3101 = vmatmul.mubr.msk.f32.vlgmr.msra.gmra.mxu0 %vm488_vm0, %v708_v45  ;;  %v1842_v45 = vld [vmem:[%s4462_s6 + $0x168] sm:$0xff] }
 0x1fe   : > { %v710_v46 = vpop.f32.mrf.mxu1  ;;  %2812 = vmatpush1.msk.msra.mxu0 %vm796_vm2, %v2809_v39  ;;  %869 = vmatprep.mubr.f32.mxu0 %v3288_v2  ;;  %v1826_v39 = vld [vmem:[%s4462_s6 + $0xe8] sm:$0xff] }
 0x1ff   : > { %2817 = vmatprep.subr.msk.mxu0 %vm796_vm2, %v949_v48  ;;  %v1823_v46 = vld [vmem:[%s4462_s6 + $0xd0] sm:$0xff] }
 0x200   : > { %v1807_v48 = vld [vmem:[%s4462_s6 + $0x50] sm:$0xff] }
 0x2bd   : > { %v781_v52 = vpop.f32.mrf.mxu0 }
 0x2be   : > { %2813 = vmatmul.mubr.msk.f32.vlgmr.msra.gmra.mxu0 %vm792_vm3, %v781_v52  ;;  %2816 = vmatmul.mubr.msk.f32.vlgmr.msra.gmra.mxu1 %vm792_vm3, %v781_v52  ;;  %v1806_v52 = vld [vmem:[%s4462_s6 + $0x48] sm:$0xff] }
 0x2bf   : > { %v3102_v53 = vpop.f32.mrf.mxu0  ;;  %2818 = vmatpush1.msk.msra.mxu0 %vm796_vm2, %v634_v47  ;;  %1026 = vmatprep.mubr.f32.mxu0 %v3288_v2  ;;  %v1857_v47 = vld [vmem:[%s4462_s6 + $0x1e0] sm:$0xff] }
 0x2c0   : > { %2821 = vmatpush1.msk.msra.mxu1 %vm796_vm2, %v635_v49  ;;  %1097 = vmatprep.mubr.f32.mxu1 %v3288_v2  ;;  %v1841_v49 = vld [vmem:[%s4462_s6 + $0x160] sm:$0xff]  ;;  %v1840_v53 = vld [vmem:[%s4462_s6 + $0x158] sm:$0xff] }
 0x2c1   : > { %1110 = vmatprep.subr.mxu0 %v3288_v2  ;;  %3103 = vmatprep.subr.mxu1 %v3288_v2 }
 0x2c2   : > { %2819 = vmatmul.mubr.msk.f32.vlgmr.msra.gmra.mxu0 %vm792_vm3, %v630_v43  ;;  %2822 = vmatmul.mubr.msk.f32.vlgmr.msra.gmra.mxu1 %vm792_vm3, %v630_v43  ;;  %v1824_v43 = vld [vmem:[%s4462_s6 + $0xd8] sm:$0xff] }
 0x2c3   : > { %1111 = vmatpush1.msra.mxu0 %v3459_v8  ;;  %2824 = vmatprep.mubr.msk.f32.mxu0 %vm488_vm0, %v1107_v54  ;;  %v1821_v54 = vld [vmem:[%s4462_s6 + $0xc0] sm:$0xff] }
 0x2c4   : > { %1112 = vmatprep.subr.mxu0 %v3288_v2  ;;  %3104 = vmatpush3.msra.mxu1 %v3420_v1 }
 0x2c5   : > { %1113 = vmatpush1.msra.mxu0 %v3462_v9  ;;  %3105 = vmatprep.subr.mxu1 %v3288_v2 }
 0x2c6   : > { %1114 = vmatprep.subr.mxu0 %v3288_v2  ;;  %3106 = vmatpush3.msra.mxu1 %v3429_v4 }
 0x2c7   : > { %1115 = vmatpush1.msra.mxu0 %v3474_v11  ;;  %3107 = vmatprep.subr.mxu1 %v3288_v2 }
 0x2c8   : > { %1116 = vmatprep.subr.mxu0 %v3288_v2  ;;  %3108 = vmatpush3.msra.mxu1 %v3437_v5 }
 0x2c9   : > { %1117 = vmatpush1.msra.mxu0 %v3486_v13  ;;  %3109 = vmatprep.subr.mxu1 %v3288_v2 }
 0x2ca   : > { %1118 = vmatprep.subr.mxu0 %v3288_v2  ;;  %3110 = vmatpush3.msra.mxu1 %v3444_v6 }
 0x2cb   : > { %1119 = vmatpush1.msra.mxu0 %v3498_v15  ;;  %3111 = vmatprep.subr.mxu1 %v3288_v2 }
 0x2cc   : > { %1120 = vmatprep.subr.mxu0 %v3288_v2  ;;  %3112 = vmatpush3.msra.mxu1 %v3456_v7 }
 0x2cd   : > { %1121 = vmatpush1.msra.mxu0 %v3505_v16  ;;  %3113 = vmatprep.subr.mxu1 %v3288_v2 }
 0x2ce   : > { %1122 = vmatprep.subr.mxu0 %v3288_v2  ;;  %3114 = vmatpush3.msra.mxu1 %v3470_v10 }
 0x2cf   : > { %1123 = vmatpush1.msra.mxu0 %v3512_v17  ;;  %3115 = vmatprep.subr.mxu1 %v3288_v2 }
 0x2d0   : > { %1124 = vmatprep.subr.mxu0 %v3288_v2  ;;  %3116 = vmatpush3.msra.mxu1 %v3482_v12 }
 0x2d1   : > { %1125 = vmatpush1.msra.mxu0 %v3517_v18  ;;  %3117 = vmatprep.subr.mxu1 %v3288_v2 }
 0x2d2   : > { %1126 = vmatprep.subr.mxu0 %v3288_v2  ;;  %3118 = vmatpush3.msra.mxu1 %v3494_v14 }
 0x2d3   : > { %1127 = vmatpush1.msra.mxu0 %v3522_v19  ;;  %3119 = vmatprep.mubr.msk.f32.mxu1 %vm3289_vm1, %v3288_v2 }
 0x2d4   : > { %1128 = vmatprep.subr.mxu0 %v3288_v2  ;;  %2828 = vmatprep.subr.msk.mxu1 %vm796_vm2, %v1258_v56  ;;  %v1805_v56 = vld [vmem:[%s4462_s6 + $0x40] sm:$0xff] }
 0x2d5   : > { %1129 = vmatpush1.msra.mxu0 %v3527_v20 }
 0x2d6   : > { %1130 = vmatprep.subr.mxu0 %v3288_v2 }
 0x2d7   : > { %1131 = vmatpush1.msra.mxu0 %v3532_v21 }
 0x2d8   : > { %1132 = vmatprep.subr.mxu0 %v3288_v2 }
 0x2d9   : > { %1133 = vmatpush1.msra.mxu0 %v3537_v22 }
 0x2da   : > { %1134 = vmatprep.subr.mxu0 %v3288_v2 }
 0x2db   : > { %1135 = vmatpush1.msra.mxu0 %v3542_v23 }
 0x2dc   : > { %1136 = vmatprep.subr.mxu0 %v3288_v2 }
 0x2dd   : > { %1137 = vmatpush1.msra.mxu0 %v3547_v24 }
 0x2de   : > { %1138 = vmatprep.subr.mxu0 %v3288_v2 }
 0x2df   : > { %1139 = vmatpush1.msra.mxu0 %v3552_v25 }
 0x2e0   : > { %1140 = vmatprep.subr.mxu0 %v3288_v2 }
 0x2e1   : > { %1141 = vmatpush1.msra.mxu0 %v3557_v26 }
 0x2e2   : > { %1158 = vmatprep.subr.mxu0 %v3288_v2 }
 0x2e3   : > { %1159 = vmatpush2.msra.mxu0 %v3562_v27 }
 0x2e4   : > { %1160 = vmatprep.subr.mxu0 %v3288_v2 }
 0x2e5   : > { %1161 = vmatpush2.msra.mxu0 %v3567_v28 }
 0x2e6   : > { %1162 = vmatprep.subr.mxu0 %v3288_v2 }
 0x2e7   : > { %1163 = vmatpush2.msra.mxu0 %v3572_v29 }
 0x2e8   : > { %1164 = vmatprep.subr.mxu0 %v3288_v2 }
 0x2e9   : > { %1165 = vmatpush2.msra.mxu0 %v3577_v30 }
 0x2ea   : > { %1166 = vmatprep.subr.mxu0 %v3288_v2 }
 0x2eb   : > { %1167 = vmatpush2.msra.mxu0 %v3582_v31 }
 0x2ec   : > { %1168 = vmatprep.subr.mxu0 %v3288_v2 }
 0x2ed   : > { %1169 = vmatpush2.msra.mxu0 %v3587_v32 }
 0x2ee   : > { %1170 = vmatprep.subr.mxu0 %v3288_v2 }
 0x2ef   : > { %1171 = vmatpush2.msra.mxu0 %v3592_v33 }
 0x2f0   : > { %1172 = vmatprep.subr.mxu0 %v3288_v2 }
 0x2f1   : > { %1173 = vmatpush2.msra.mxu0 %v3597_v34 }
 0x2f2   : > { %1175 = vmatmul.mubr.f32.vlgmr.msra.gmra.mxu0 %v3699_v51  ;;  %3122 = vmatprep.subr.mxu0 %v3288_v2  ;;  %v1856_v51 = vld [vmem:[%s4462_s6 + $0x1d8] sm:$0xff] }
 0x2f3   : > { %3123 = vmatpush3.msra.mxu0 %v3420_v1  ;;  %3138 = vmatprep.mubr.msk.f32.mxu0 %vm3289_vm1, %v3288_v2 }
 0x2f4   : > { %3124 = vmatprep.subr.mxu0 %v3288_v2 }
 0x2f5   : > { %3125 = vmatpush3.msra.mxu0 %v3429_v4 }
 0x2f6   : > { %3126 = vmatprep.subr.mxu0 %v3288_v2 }
 0x2f7   : > { %3127 = vmatpush3.msra.mxu0 %v3437_v5 }
 0x2f8   : > { %3128 = vmatprep.subr.mxu0 %v3288_v2 }
 0x2f9   : > { %3129 = vmatpush3.msra.mxu0 %v3444_v6  ;;  %v2827_v6 = vld [vmem:[%s4459_s3 + $0x28] sm:$0xff] }
 0x2fa   : > { %3130 = vmatprep.subr.mxu0 %v3288_v2 }
 0x2fb   : > { %3131 = vmatpush3.msra.mxu0 %v3456_v7  ;;  %v1259_v7 = vcombine.high %v2827_v6, %v2827_v6 }
 0x2fc   : > { %3132 = vmatprep.subr.mxu0 %v3288_v2 }
 0x2fd   : > { %3133 = vmatpush3.msra.mxu0 %v3470_v10 }
 0x2fe   : > { %3134 = vmatprep.subr.mxu0 %v3288_v2 }
 0x2ff   : > { %3135 = vmatpush3.msra.mxu0 %v3482_v12  ;;  %v2834_v12 = vld [vmem:[%s4458_s2 + $0x18] sm:$0x77] }
 0x300   : > { %3136 = vmatprep.subr.mxu0 %v3288_v2  ;;  %v1420_v36 = vcombine.high %v2834_v12, %v2834_v12 }
 0x301   : > { %3137 = vmatpush3.msra.mxu0 %v3494_v14 }
 0x37e   : > { %v871_v57 = vpop.f32.mrf.mxu0  ;;  %v942_v58 = vpop.f32.mrf.mxu1 }
 0x380   : > { %v873_v59 = vpop.f32.mrf.mxu0  ;;  %v3801_v60 = vpop.f32.mrf.mxu1 }
 0x382   : > { %v1028_v61 = vpop.f32.mrf.mxu0  ;;  %v1099_v62 = vpop.f32.mrf.mxu1 }
 0x383   : > { %v3803_v63 = vadd.f32 %v1028_v61, %v871_v57  ;;  %v3805_v0 = vadd.f32 %v1099_v62, %v942_v58  ;;  %v1839_v57 = vld [vmem:[%s4462_s6 + $0x150] sm:$0xff]  ;;  %v1820_v58 = vld [vmem:[%s4462_s6 + $0xb8] sm:$0xff]  ;;  %v1838_v61 = vld [vmem:[%s4462_s6 + $0x148] sm:$0xff] }
 0x384   : > { %v1030_v1 = vpop.f32.mrf.mxu0  ;;  %v3816_v10 = vpop.f32.mrf.mxu1  ;;  %v1819_v62 = vld [vmem:[%s4462_s6 + $0xb0] sm:$0xff] }
 0x385   : > { %v3807_v3 = vadd.f32 %v1030_v1, %v873_v59  ;;  %v1854_v59 = vld [vmem:[%s4462_s6 + $0x1c8] sm:$0xff]  ;;  %v1837_v1 = vld [vmem:[%s4462_s6 + $0x140] sm:$0xff] }
 0x3b2   : > { %v1176_v4 = vpop.f32.mrf.mxu0 }
 0x3b3   : > { %3120 = vmatmul.mubr.msk.f32.vlgmr.msra.gmra.mxu1 %vm488_vm0, %v1176_v4  ;;  %v1852_v4 = vld [vmem:[%s4462_s6 + $0x1b8] sm:$0xff] }
 0x3b4   : > { %v1178_v5 = vpop.f32.mrf.mxu0  ;;  %2829 = vmatpush1.msk.msra.mxu1 %vm796_vm2, %v2826_v55  ;;  %1335 = vmatprep.mubr.f32.mxu1 %v3288_v2  ;;  %v1855_v55 = vld [vmem:[%s4462_s6 + $0x1d0] sm:$0xff] }
 0x3b5   : > { %2831 = vmatprep.subr.msk.mxu1 %vm796_vm2, %v1259_v7  ;;  %v1802_v5 = vld [vmem:[%s4462_s6 + $0x28] sm:$0xff]  ;;  %v1817_v7 = vld [vmem:[%s4462_s6 + $0xa0] sm:$0xff] }
 0x473   : > { %v1249_v14 = vpop.f32.mrf.mxu1 }
 0x474   : > { %2830 = vmatmul.mubr.msk.f32.vlgmr.msra.gmra.mxu1 %vm792_vm3, %v1249_v14 }
 0x475   : > { %v3121_v35 = vpop.f32.mrf.mxu1  ;;  %2832 = vmatpush1.msk.msra.mxu1 %vm796_vm2, %v2827_v6  ;;  %1406 = vmatprep.mubr.f32.mxu1 %v3288_v2  ;;  %v1836_v6 = vld [vmem:[%s4462_s6 + $0x138] sm:$0xff] }
 0x476   : > { %1423 = vmatprep.subr.mxu1 %v3288_v2  ;;  %v1816_v35 = vld [vmem:[%s4462_s6 + $0x98] sm:$0xff] }
 0x478   : > { %2833 = vmatmul.mubr.msk.f32.vlgmr.msra.gmra.mxu1 %vm792_vm3, %v1249_v14  ;;  %v1835_v14 = vld [vmem:[%s4462_s6 + $0x130] sm:$0xff] }
 0x479   : > { %1424 = vmatpush1.msra.mxu1 %v3459_v8  ;;  %2835 = vmatprep.mubr.msk.f32.mxu1 %vm488_vm0, %v1420_v36  ;;  %v2837_v8 = vld [vmem:[%s4459_s3 + $0x30] sm:$0xff]  ;;  %v1850_v36 = vld [vmem:[%s4462_s6 + $0x1a8] sm:$0xff] }
 0x47a   : > { %1425 = vmatprep.subr.mxu1 %v3288_v2 }
 0x47b   : > { %1426 = vmatpush1.msra.mxu1 %v3462_v9  ;;  %v1571_v9 = vcombine.high %v2837_v8, %v2837_v8 }
 0x47c   : > { %1427 = vmatprep.subr.mxu1 %v3288_v2 }
 0x47d   : > { %1428 = vmatpush1.msra.mxu1 %v3474_v11  ;;  %2839 = vmatprep.subr.msk.mxu0 %vm796_vm2, %v1571_v9  ;;  %v1834_v9 = vld [vmem:[%s4462_s6 + $0x128] sm:$0xff] }
 0x47e   : > { %1429 = vmatprep.subr.mxu1 %v3288_v2 }
 0x47f   : > { %1430 = vmatpush1.msra.mxu1 %v3486_v13 }
 0x480   : > { %1431 = vmatprep.subr.mxu1 %v3288_v2 }
 0x481   : > { %1432 = vmatpush1.msra.mxu1 %v3498_v15 }
 0x482   : > { %1433 = vmatprep.subr.mxu1 %v3288_v2 }
 0x483   : > { %1434 = vmatpush1.msra.mxu1 %v3505_v16 }
 0x484   : > { %1435 = vmatprep.subr.mxu1 %v3288_v2 }
 0x485   : > { %1436 = vmatpush1.msra.mxu1 %v3512_v17 }
 0x486   : > { %1437 = vmatprep.subr.mxu1 %v3288_v2 }
 0x487   : > { %1438 = vmatpush1.msra.mxu1 %v3517_v18  ;;  %v1102_v18 = vadd.f32 %v3816_v10, %v3801_v60  ;;  %v1804_v60 = vld [vmem:[%s4462_s6 + $0x38] sm:$0xff]  ;;  %v1851_v10 = vld [vmem:[%s4462_s6 + $0x1b0] sm:$0xff] }
 0x488   : > { %1439 = vmatprep.subr.mxu1 %v3288_v2 }
 0x489   : > { %1440 = vmatpush1.msra.mxu1 %v3522_v19 }
 0x48a   : > { %1441 = vmatprep.subr.mxu1 %v3288_v2 }
 0x48b   : > { %1442 = vmatpush1.msra.mxu1 %v3527_v20 }
 0x48c   : > { %1443 = vmatprep.subr.mxu1 %v3288_v2 }
 0x48d   : > { %1444 = vmatpush1.msra.mxu1 %v3532_v21 }
 0x48e   : > { %1445 = vmatprep.subr.mxu1 %v3288_v2 }
 0x48f   : > { %1446 = vmatpush1.msra.mxu1 %v3537_v22 }
 0x490   : > { %1447 = vmatprep.subr.mxu1 %v3288_v2 }
 0x491   : > { %1448 = vmatpush1.msra.mxu1 %v3542_v23 }
 0x492   : > { %1449 = vmatprep.subr.mxu1 %v3288_v2 }
 0x493   : > { %1450 = vmatpush1.msra.mxu1 %v3547_v24  ;;  %v2838_v24 = vld [vmem:[%s4459_s3 + $0x38] sm:$0xff] }
 0x494   : > { %1451 = vmatprep.subr.mxu1 %v3288_v2 }
 0x495   : > { %1452 = vmatpush1.msra.mxu1 %v3552_v25  ;;  %v1572_v25 = vcombine.high %v2838_v24, %v2838_v24 }
 0x496   : > { %1453 = vmatprep.subr.mxu1 %v3288_v2 }
 0x497   : > { %1454 = vmatpush1.msra.mxu1 %v3557_v26  ;;  %v1860_v26 = vld [vmem:[%s4462_s6 + $0x1f8] sm:$0xff] }
 0x498   : > { %1471 = vmatprep.subr.mxu1 %v3288_v2 }
 0x499   : > { %1472 = vmatpush2.msra.mxu1 %v3562_v27  ;;  %v1844_v27 = vld [vmem:[%s4462_s6 + $0x178] sm:$0xff] }
 0x49a   : > { %1473 = vmatprep.subr.mxu1 %v3288_v2 }
 0x49b   : > { %1474 = vmatpush2.msra.mxu1 %v3567_v28  ;;  %v1859_v28 = vld [vmem:[%s4462_s6 + $0x1f0] sm:$0xff] }
 0x49c   : > { %1475 = vmatprep.subr.mxu1 %v3288_v2 }
 0x49d   : > { %1476 = vmatpush2.msra.mxu1 %v3572_v29  ;;  %v1843_v29 = vld [vmem:[%s4462_s6 + $0x170] sm:$0xff] }
 0x49e   : > { %1477 = vmatprep.subr.mxu1 %v3288_v2 }
 0x49f   : > { %1478 = vmatpush2.msra.mxu1 %v3577_v30  ;;  %v1858_v30 = vld [vmem:[%s4462_s6 + $0x1e8] sm:$0xff] }
 0x4a0   : > { %1479 = vmatprep.subr.mxu1 %v3288_v2 }
 0x4a1   : > { %1480 = vmatpush2.msra.mxu1 %v3582_v31 }
 0x4a2   : > { %1481 = vmatprep.subr.mxu1 %v3288_v2 }
 0x4a3   : > { %1482 = vmatpush2.msra.mxu1 %v3587_v32  ;;  %v1828_v32 = vld [vmem:[%s4462_s6 + $0xf8] sm:$0xff] }
 0x4a4   : > { %1483 = vmatprep.subr.mxu1 %v3288_v2 }
 0x4a5   : > { %1484 = vmatpush2.msra.mxu1 %v3592_v33 }
 0x4a6   : > { %1485 = vmatprep.subr.mxu1 %v3288_v2 }
 0x4a7   : > { %1486 = vmatpush2.msra.mxu1 %v3597_v34  ;;  %v1812_v34 = vld [vmem:[%s4462_s6 + $0x78] sm:$0xff] }
 0x4a8   : > { %1488 = vmatmul.mubr.f32.vlgmr.msra.gmra.mxu1 %v2834_v12  ;;  %2942 = vmatprep.subr.mxu1 %v1860_v26  ;;  %v1801_v12 = vld [vmem:[%s4462_s6 + $0x20] sm:$0xff]  ;;  %v1847_v26 = vld [vmem:[%s4462_s6 + $0x190] sm:$0xff] }
 0x4a9   : > { %2943 = vmatpush3.msra.mxu1 %v1844_v27  ;;  %v1797_v27 = vld [vmem:[%s4462_s6] sm:$0xff] }
 0x4aa   : > { %2944 = vmatprep.subr.mxu1 %v1859_v28  ;;  %v1831_v28 = vld [vmem:[%s4462_s6 + $0x110] sm:$0xff] }
 0x4ab   : > { %2945 = vmatpush3.msra.mxu1 %v1843_v29  ;;  %v1846_v29 = vld [vmem:[%s4462_s6 + $0x188] sm:$0xff] }
 0x4ac   : > { %2946 = vmatprep.subr.mxu1 %v1858_v30  ;;  %v1830_v30 = vld [vmem:[%s4462_s6 + $0x108] sm:$0xff] }
 0x4ad   : > { %2947 = vmatpush3.msra.mxu1 %v1842_v45 }
 0x4ae   : > { %2948 = vmatprep.subr.mxu1 %v1857_v47 }
 0x4af   : > { %2949 = vmatpush3.msra.mxu1 %v1841_v49 }
 0x4b0   : > { %2950 = vmatprep.subr.mxu1 %v1856_v51 }
 0x4b1   : > { %2951 = vmatpush3.msra.mxu1 %v1840_v53 }
 0x4b2   : > { %2952 = vmatprep.subr.mxu1 %v1855_v55 }
 0x4b3   : > { %2953 = vmatpush3.msra.mxu1 %v1839_v57 }
 0x4b4   : > { %2954 = vmatprep.subr.mxu1 %v1854_v59 }
 0x4b5   : > { %2955 = vmatpush3.msra.mxu1 %v1838_v61 }
 0x534   : > { %v1337_v11 = vpop.f32.mrf.mxu1 }
 0x535   : > { %v3879_v13 = vadd.f32 %v1337_v11, %v3803_v63  ;;  %v1853_v63 = vld [vmem:[%s4462_s6 + $0x1c0] sm:$0xff]  ;;  %v1815_v11 = vld [vmem:[%s4462_s6 + $0x90] sm:$0xff] }
 0x536   : > { %v1339_v15 = vpop.f32.mrf.mxu1  ;;  %2956 = vmatprep.subr.mxu1 %v1853_v63 }
 0x537   : > { %v3882_v16 = vadd.f32 %v1339_v15, %v3807_v3  ;;  %2957 = vmatpush3.msra.mxu1 %v1837_v1  ;;  %v1818_v3 = vld [vmem:[%s4462_s6 + $0xa8] sm:$0xff]  ;;  %v1849_v15 = vld [vmem:[%s4462_s6 + $0x1a0] sm:$0xff] }
 0x538   : > { %v1408_v17 = vpop.f32.mrf.mxu1  ;;  %2958 = vmatprep.subr.mxu1 %v1852_v4 }
 0x539   : > { %v3887_v19 = vadd.f32 %v1408_v17, %v3805_v0  ;;  %v1803_v0 = vld [vmem:[%s4462_s6 + $0x30] sm:$0xff]  ;;  %2959 = vmatpush3.msra.mxu1 %v1836_v6  ;;  %v1771_v6 = vld [vmem:[%s4461_s5] sm:$0xf] }
 0x53a   : > { %v1410_v20 = vpop.f32.mrf.mxu1  ;;  %2960 = vmatprep.subr.mxu1 %v1851_v10  ;;  %v1799_v17 = vld [vmem:[%s4462_s6 + $0x10] sm:$0xff] }
 0x53b   : > { %v3889_v21 = vadd.f32 %v1410_v20, %v1102_v18  ;;  %2961 = vmatpush3.msra.mxu1 %v1835_v14  ;;  %v1833_v18 = vld [vmem:[%s4462_s6 + $0x120] sm:$0xff]  ;;  %v1814_v20 = vld [vmem:[%s4462_s6 + $0x88] sm:$0xff] }
 0x53c   : > { %2962 = vmatprep.subr.mxu1 %v1850_v36 }
 0x53d   : > { %2963 = vmatpush3.msra.mxu1 %v1834_v9 }
 0x53e   : > { %2964 = vmatprep.subr.mxu1 %v1849_v15 }
 0x53f   : > { %2965 = vmatpush3.msra.mxu1 %v1833_v18 }
 0x568   : > { %v1489_v22 = vpop.f32.mrf.mxu1 }
 0x569   : > { %3139 = vmatmul.mubr.msk.f32.vlgmr.msra.gmra.mxu0 %vm488_vm0, %v1489_v22  ;;  %v1848_v22 = vld [vmem:[%s4462_s6 + $0x198] sm:$0xff] }
 0x56a   : > { %v1491_v23 = vpop.f32.mrf.mxu1  ;;  %2840 = vmatpush1.msk.msra.mxu0 %vm796_vm2, %v2837_v8  ;;  %1648 = vmatprep.mubr.f32.mxu0 %v3288_v2  ;;  %v1800_v8 = vld [vmem:[%s4462_s6 + $0x18] sm:$0xff] }
 0x56b   : > { %2842 = vmatprep.subr.msk.mxu0 %vm796_vm2, %v1572_v25  ;;  %v1798_v23 = vld [vmem:[%s4462_s6 + $0x8] sm:$0xff]  ;;  %2966 = vmatprep.subr.mxu1 %v1848_v22  ;;  %v1813_v25 = vld [vmem:[%s4462_s6 + $0x80] sm:$0xff] }
 0x629   : > { %v1562_v31 = vpop.f32.mrf.mxu0 }
 0x62a   : > { %2841 = vmatmul.mubr.msk.f32.vlgmr.msra.gmra.mxu0 %vm792_vm3, %v1562_v31 }
 0x62b   : > { %v3140_v33 = vpop.f32.mrf.mxu0  ;;  %2843 = vmatpush1.msk.msra.mxu0 %vm796_vm2, %v2838_v24  ;;  %1719 = vmatprep.mubr.f32.mxu0 %v3288_v2  ;;  %v1832_v24 = vld [vmem:[%s4462_s6 + $0x118] sm:$0xff] }
 0x62c   : > { %2907 = vmatprep.subr.mxu0 %v1828_v32  ;;  %2967 = vmatpush3.msra.mxu1 %v1832_v24  ;;  %v1829_v32 = vld [vmem:[%s4462_s6 + $0x100] sm:$0xff] }
 0x62d   : > { %2968 = vmatprep.subr.mxu1 %v1847_v26  ;;  %v1730_v33 = vld [vmem:[%s4460_s4] sm:$0x77] }
 0x62e   : > { %2844 = vmatmul.mubr.msk.f32.vlgmr.msra.gmra.mxu0 %vm792_vm3, %v1562_v31  ;;  %2969 = vmatpush3.msra.mxu1 %v1831_v28  ;;  %v1845_v31 = vld [vmem:[%s4462_s6 + $0x180] sm:$0xff] }
 0x62f   : > { %2908 = vmatpush3.msra.mxu0 %v1812_v34  ;;  %2970 = vmatprep.subr.mxu1 %v1846_v29  ;;  %v2002_v29 = vld [vmem:[%s4463_s7 + $0x8] sm:$0xff] }
 0x630   : > { %2909 = vmatprep.subr.mxu0 %v1827_v37  ;;  %2971 = vmatpush3.msra.mxu1 %v1830_v30  ;;  %v2004_v30 = vld [vmem:[%s4463_s7 + $0x18] sm:$0xff] }
 0x631   : > { %2910 = vmatpush3.msra.mxu0 %v1811_v38  ;;  %2972 = vmatprep.subr.mxu1 %v1845_v31  ;;  %v1734_v38 = vcombine.high %v1730_v33, %v1730_v33  ;;  %v2001_v31 = vld [vmem:[%s4463_s7] sm:$0xff] }
 0x632   : > { %2911 = vmatprep.subr.mxu0 %v1826_v39  ;;  %2973 = vmatpush3.msra.mxu1 %v1829_v32  ;;  %v1731_v39 = vld [vmem:[%s4460_s4 + $0x8] sm:$0x77]  ;;  %v2003_v32 = vld [vmem:[%s4463_s7 + $0x10] sm:$0xff] }
 0x633   : > { %2912 = vmatpush3.msra.mxu0 %v1810_v40  ;;  %2110 = vmatprep.subr.mxu1 %v2004_v30  ;;  %v2238_v30 = vld [vmem:[%s4465_s9 + $0x198] sm:$0xff] }
 0x634   : > { %2913 = vmatprep.subr.mxu0 %v1825_v41 }
 0x635   : > { %2914 = vmatpush3.msra.mxu0 %v1809_v42 }
 0x636   : > { %2915 = vmatprep.subr.mxu0 %v1824_v43 }
 0x637   : > { %2916 = vmatpush3.msra.mxu0 %v1808_v44  ;;  %v1735_v44 = vcombine.high %v1731_v39, %v1731_v39 }
 0x638   : > { %2917 = vmatprep.subr.mxu0 %v1823_v46 }
 0x639   : > { %2918 = vmatpush3.msra.mxu0 %v1807_v48  ;;  %v1773_v48 = vlaneseq }
 0x63a   : > { %2919 = vmatprep.subr.mxu0 %v1822_v50 }
 0x63b   : > { %2920 = vmatpush3.msra.mxu0 %v1806_v52 }
 0x63c   : > { %2921 = vmatprep.subr.mxu0 %v1821_v54 }
 0x63d   : > { %2922 = vmatpush3.msra.mxu0 %v1805_v56  ;;  %v1774_v56 = vshrl.u32 %v1773_v48, 7  ;;  %v2233_v48 = vld [vmem:[%s4465_s9 + $0x170] sm:$0xff] }
 0x63e   : > { %2923 = vmatprep.subr.mxu0 %v1820_v58 }
 0x63f   : > { %2924 = vmatpush3.msra.mxu0 %v1804_v60  ;;  %v4108_v1 = vsub.s32 0, %v1774_v56  ;;  %v1783_v9 = vsub.s32 2, %v1774_v56 }
 0x640   : > { %2925 = vmatprep.subr.mxu0 %v1819_v62 }
 0x641   : > { %2926 = vmatpush3.msra.mxu0 %v1803_v0 }
 0x642   : > { %2927 = vmatprep.subr.mxu0 %v1818_v3 }
 0x643   : > { %2928 = vmatpush3.msra.mxu0 %v1802_v5 }
 0x644   : > { %2929 = vmatprep.subr.mxu0 %v1817_v7 }
 0x645   : > { %2930 = vmatpush3.msra.mxu0 %v1801_v12 }
 0x646   : > { %2931 = vmatprep.subr.mxu0 %v1816_v35  ;;  %v1787_v35 = vsub.s32 3, %v1774_v56 }
 0x647   : > { %2932 = vmatpush3.msra.mxu0 %v1800_v8  ;;  %v1776_v8 = vrot.slane %v1771_v6, %v4108_v1 }
 0x648   : > { %2933 = vmatprep.subr.mxu0 %v1815_v11  ;;  %v1788_v22 = vrot.slane %v1771_v6, %v1787_v35  ;;  %v2209_v35 = vld [vmem:[%s4465_s9 + $0xb0] sm:$0xff] }
 0x649   : > { %2934 = vmatpush3.msra.mxu0 %v1799_v17 }
 0x64a   : > { %2935 = vmatprep.subr.mxu0 %v1814_v20 }
 0x64b   : > { %2936 = vmatpush3.msra.mxu0 %v1798_v23 }
 0x64c   : > { %2937 = vmatprep.subr.mxu0 %v1813_v25  ;;  %v1784_v25 = vrot.slane %v1771_v6, %v1783_v9  ;;  %v2225_v9 = vld [vmem:[%s4465_s9 + $0x130] sm:$0xff] }
 0x64d   : > { %2938 = vmatpush3.msra.mxu0 %v1797_v27 }
 0x64e   : > { %2039 = vmatprep.subr.mxu0 %v2002_v29  ;;  %v2206_v29 = vld [vmem:[%s4465_s9 + $0x98] sm:$0xff] }
 0x6ea   : > { %v1650_v34 = vpop.f32.mrf.mxu0 }
 0x6eb   : > { %v1726_v37 = vadd.f32 %v1650_v34, %v3879_v13 }
 0x6ec   : > { %v1652_v40 = vpop.f32.mrf.mxu0 }
 0x6ed   : > { %v1738_v41 = vmul.f32 %v1730_v33, %v1726_v37  ;;  %v1727_v42 = vadd.f32 %v1652_v40, %v3882_v16  ;;  %v2250_v33 = vld [vmem:[%s4465_s9 + $0x1f8] sm:$0xff] }
 0x6ee   : > { %v1721_v43 = vpop.f32.mrf.mxu0 }
 0x6ef   : > { %v1743_v45 = vsel %vm1742_vm4, %v1738_v41, 0.0  ;;  %v1739_v46 = vmul.f32 %v1734_v38, %v1727_v42  ;;  %v1728_v47 = vadd.f32 %v1721_v43, %v3887_v19  ;;  %v1779_v19 = vsub.s32 1, %v1774_v56  ;;  %v2202_v43 = vld [vmem:[%s4465_s9 + $0x78] sm:$0xff] }
 0x6f0   : > { %v1744_v49 = vrot.slane %v1743_v45, 4  ;;  %v1723_v13 = vpop.f32.mrf.mxu0  ;;  %v2246_v56 = vld [vmem:[%s4465_s9 + $0x1d8] sm:$0xff] }
 0x6f1   : > { %v1750_v50 = vsel %vm1742_vm4, %v1739_v46, 0.0  ;;  %v1740_v51 = vmul.f32 %v1731_v39, %v1728_v47  ;;  %v1729_v52 = vadd.f32 %v1723_v13, %v3889_v21  ;;  %v1780_v7 = vrot.slane %v1771_v6, %v1779_v19  ;;  %v2249_v46 = vld [vmem:[%s4465_s9 + $0x1f0] sm:$0xff]  ;;  %v2248_v13 = vld [vmem:[%s4465_s9 + $0x1e8] sm:$0xff]  ;;  %v2227_v6 = vld [vmem:[%s4465_s9 + $0x140] sm:$0xff] }
 0x6f2   : > { %v1745_v53 = vadd.f32 %v1744_v49, %v1743_v45  ;;  %v1751_v54 = vrot.slane %v1750_v50, 4  ;;  %v2217_v45 = vld [vmem:[%s4465_s9 + $0xf0] sm:$0xff]  ;;  %v2216_v49 = vld [vmem:[%s4465_s9 + $0xe8] sm:$0xff] }
 0x6f3   : > { %v1757_v55 = vsel %vm1742_vm4, %v1740_v51, 0.0  ;;  %v1741_v16 = vmul.f32 %v1735_v44, %v1729_v52  ;;  %v2234_v44 = vld [vmem:[%s4465_s9 + $0x178] sm:$0xff]  ;;  %v2201_v47 = vld [vmem:[%s4465_s9 + $0x70] sm:$0xff]  ;;  %v2232_v51 = vld [vmem:[%s4465_s9 + $0x168] sm:$0xff] }
 0x6f4   : > { %v1746_v57 = vrot.slane %v1745_v53, 2  ;;  %v1752_v58 = vadd.f32 %v1751_v54, %v1750_v50  ;;  %v1758_v59 = vrot.slane %v1757_v55, 4  ;;  %v2200_v50 = vld [vmem:[%s4465_s9 + $0x68] sm:$0xff]  ;;  %v2215_v52 = vld [vmem:[%s4465_s9 + $0xe0] sm:$0xff]  ;;  %v2197_v19 = vld [vmem:[%s4465_s9 + $0x50] sm:$0xff] }
 0x6f5   : > { %v1764_v60 = vsel %vm1742_vm4, %v1741_v16, 0.0  ;;  %v2199_v54 = vld [vmem:[%s4465_s9 + $0x60] sm:$0xff]  ;;  %v2214_v16 = vld [vmem:[%s4465_s9 + $0xd8] sm:$0xff] }
 0x6f6   : > { %v1747_v61 = vadd.f32 %v1746_v57, %v1745_v53  ;;  %v1753_v62 = vrot.slane %v1752_v58, 2  ;;  %v1759_v63 = vadd.f32 %v1758_v59, %v1757_v55  ;;  %v1765_v0 = vrot.slane %v1764_v60, 4  ;;  %v2247_v53 = vld [vmem:[%s4465_s9 + $0x1e0] sm:$0xff]  ;;  %v2198_v57 = vld [vmem:[%s4465_s9 + $0x58] sm:$0xff]  ;;  %v2213_v59 = vld [vmem:[%s4465_s9 + $0xd0] sm:$0xff] }
 0x6f7   : > { %v2231_v55 = vld [vmem:[%s4465_s9 + $0x160] sm:$0xff] }
 0x6f8   : > { %v1748_v3 = vrot.slane %v1747_v61, 1  ;;  %v1754_v21 = vadd.f32 %v1753_v62, %v1752_v58  ;;  %v1760_v4 = vrot.slane %v1759_v63, 2  ;;  %v1766_v5 = vadd.f32 %v1765_v0, %v1764_v60  ;;  %v2230_v58 = vld [vmem:[%s4465_s9 + $0x158] sm:$0xff]  ;;  %v2245_v60 = vld [vmem:[%s4465_s9 + $0x1d0] sm:$0xff]  ;;  %v2212_v62 = vld [vmem:[%s4465_s9 + $0xc8] sm:$0xff] }
 0x6f9   : > { %v2196_v0 = vld [vmem:[%s4465_s9 + $0x48] sm:$0xff] }
 0x6fa   : > { %v1761_v10 = vadd.f32 %v1760_v4, %v1759_v63  ;;  %v1767_v12 = vrot.slane %v1766_v5, 2  ;;  %v1755_v14 = vrot.slane %v1754_v21, 1  ;;  %v1749_v36 = vadd.f32 %v1748_v3, %v1747_v61  ;;  %v2229_v61 = vld [vmem:[%s4465_s9 + $0x150] sm:$0xff]  ;;  %v2244_v63 = vld [vmem:[%s4465_s9 + $0x1c8] sm:$0xff]  ;;  %v2243_v4 = vld [vmem:[%s4465_s9 + $0x1c0] sm:$0xff] }
 0x6fb   : > { %v2228_v3 = vld [vmem:[%s4465_s9 + $0x148] sm:$0xff] }
 0x6fc   : > { %v1762_v11 = vrot.slane %v1761_v10, 1  ;;  %v1768_v15 = vadd.f32 %v1767_v12, %v1766_v5  ;;  %v1756_v17 = vadd.f32 %v1755_v14, %v1754_v21  ;;  %v4116_v23 = vsub.f32 %v1749_v36, %v1776_v8  ;;  %v2211_v21 = vld [vmem:[%s4465_s9 + $0xc0] sm:$0xff]  ;;  %v2194_v12 = vld [vmem:[%s4465_s9 + $0x38] sm:$0xff]  ;;  %v2241_v36 = vld [vmem:[%s4465_s9 + $0x1b0] sm:$0xff] }
 0x6fd   : > { %v2195_v5 = vld [vmem:[%s4465_s9 + $0x40] sm:$0xff]  ;;  %v2226_v14 = vld [vmem:[%s4465_s9 + $0x138] sm:$0xff]  ;;  %v2193_v8 = vld [vmem:[%s4465_s9 + $0x30] sm:$0xff] }
 0x6fe   : > { %v4114_v18 = vsub.f32 %v1756_v17, %v1780_v7  ;;  %v1769_v20 = vrot.slane %v1768_v15, 1  ;;  %v1763_v24 = vadd.f32 %v1762_v11, %v1761_v10  ;;  %v2210_v7 = vld [vmem:[%s4465_s9 + $0xb8] sm:$0xff]  ;;  %v2208_v11 = vld [vmem:[%s4465_s9 + $0xa8] sm:$0xff] }
 0x6ff   : > { %v2242_v10 = vld [vmem:[%s4465_s9 + $0x1b8] sm:$0xff]  ;;  %v2192_v17 = vld [vmem:[%s4465_s9 + $0x28] sm:$0xff] }
 0x700   : > { %1925 = vmatprep.mubr.f32.mxu0 %v4114_v18  ;;  %v1770_v26 = vadd.f32 %v1769_v20, %v1768_v15  ;;  %v4123_v28 = vsub.f32 %v1763_v24, %v1784_v25  ;;  %v2240_v15 = vld [vmem:[%s4465_s9 + $0x1a8] sm:$0xff]  ;;  %v2239_v24 = vld [vmem:[%s4465_s9 + $0x1a0] sm:$0xff] }
 0x701   : > { %1926 = vmatmul.mubr.f32.vlgmr.msra.gmra.mxu0 %v4116_v23  ;;  %v2224_v20 = vld [vmem:[%s4465_s9 + $0x128] sm:$0xff]  ;;  %v2191_v25 = vld [vmem:[%s4465_s9 + $0x20] sm:$0xff] }
 0x702   : > { %v4120_v27 = vsub.f32 %v1770_v26, %v1788_v22  ;;  %2073 = vmatprep.mubr.f32.mxu0 %v3288_v2  ;;  %2040 = vmatpush1.msra.mxu0 %v2001_v31  ;;  %v2207_v22 = vld [vmem:[%s4465_s9 + $0xa0] sm:$0xff]  ;;  %v2190_v31 = vld [vmem:[%s4465_s9 + $0x18] sm:$0xff] }
 0x703   : > { %v2223_v26 = vld [vmem:[%s4465_s9 + $0x120] sm:$0xff] }
 0x704   : > { %1995 = vmatprep.mubr.f32.mxu1 %v4120_v27 }
 0x705   : > { %1996 = vmatmul.mubr.f32.vlgmr.msra.gmra.mxu1 %v4123_v28 }
 0x706   : > { %2144 = vmatprep.mubr.f32.mxu1 %v3288_v2  ;;  %2111 = vmatpush1.msra.mxu1 %v2003_v32  ;;  %v2218_v2 = vld [vmem:[%s4465_s9 + $0xf8] sm:$0xff] }
 0x707   : > { %2977 = vmatprep.subr.mxu0 %v2218_v2  ;;  %3012 = vmatprep.subr.mxu1 %v2250_v33  ;;  %v2222_v32 = vld [vmem:[%s4465_s9 + $0x118] sm:$0xff]  ;;  %v2205_v2 = vld [vmem:[%s4465_s9 + $0x90] sm:$0xff] }
 0x708   : > { %v2237_v33 = vld [vmem:[%s4465_s9 + $0x190] sm:$0xff] }
 0x7c1   : > { %v2939_v34 = vpop.f32.mrf.mxu0 }
 0x7c3   : > { %v2940_v37 = vpop.f32.mrf.mxu0 }
 0x7c4   : > { %v2941_v40 = vadd.f32 %v2940_v37, %v2939_v34  ;;  %v2189_v34 = vld [vmem:[%s4465_s9 + $0x10] sm:$0xff] }
 0x7c5   : > { %v2974_v38 = vpop.f32.mrf.mxu1  ;;  %v2221_v37 = vld [vmem:[%s4465_s9 + $0x110] sm:$0xff] }
 0x7c7   : > { %v2975_v39 = vpop.f32.mrf.mxu1 }
 0x7c8   : > { %v2976_v41 = vadd.f32 %v2975_v39, %v2974_v38  ;;  %v2204_v38 = vld [vmem:[%s4465_s9 + $0x88] sm:$0xff] }
 0x7c9   : > { %v2236_v39 = vld [vmem:[%s4465_s9 + $0x188] sm:$0xff] }
 0x7ca   : > { %v1998_v42 = vadd.f32 %v2976_v41, %v2941_v40  ;;  %v2188_v40 = vld [vmem:[%s4465_s9 + $0x8] sm:$0xff] }
 0x7cb   : > { %v2220_v41 = vld [vmem:[%s4465_s9 + $0x108] sm:$0xff] }
 0x7cc   : > { %2845 = vmatmul.mubr.msk.f32.vlgmr.msra.gmra.mxu0 %vm2005_vm5, %v1998_v42  ;;  %2846 = vmatmul.mubr.msk.f32.vlgmr.msra.gmra.mxu1 %vm2005_vm5, %v1998_v42  ;;  %v2203_v42 = vld [vmem:[%s4465_s9 + $0x80] sm:$0xff] }
 0x7cd   : > { %2978 = vmatpush3.msra.mxu0 %v2202_v43  ;;  %3013 = vmatpush3.msra.mxu1 %v2234_v44  ;;  %v2235_v43 = vld [vmem:[%s4465_s9 + $0x180] sm:$0xff] }
 0x7ce   : > { %2979 = vmatprep.subr.mxu0 %v2217_v45  ;;  %3014 = vmatprep.subr.mxu1 %v2249_v46  ;;  %v2187_v44 = vld [vmem:[%s4465_s9] sm:$0xff] }
 0x7cf   : > { %2980 = vmatpush3.msra.mxu0 %v2201_v47  ;;  %3015 = vmatpush3.msra.mxu1 %v2233_v48  ;;  %v2219_v45 = vld [vmem:[%s4465_s9 + $0x100] sm:$0xff] }
 0x7d0   : > { %2981 = vmatprep.subr.mxu0 %v2216_v49  ;;  %3016 = vmatprep.subr.mxu1 %v2248_v13 }
 0x7d1   : > { %2982 = vmatpush3.msra.mxu0 %v2200_v50  ;;  %3017 = vmatpush3.msra.mxu1 %v2232_v51 }
 0x7d2   : > { %2983 = vmatprep.subr.mxu0 %v2215_v52  ;;  %3018 = vmatprep.subr.mxu1 %v2247_v53 }
 0x7d3   : > { %2984 = vmatpush3.msra.mxu0 %v2199_v54  ;;  %3019 = vmatpush3.msra.mxu1 %v2231_v55 }
 0x7d4   : > { %2985 = vmatprep.subr.mxu0 %v2214_v16  ;;  %3020 = vmatprep.subr.mxu1 %v2246_v56 }
 0x7d5   : > { %2986 = vmatpush3.msra.mxu0 %v2198_v57  ;;  %3021 = vmatpush3.msra.mxu1 %v2230_v58 }
 0x7d6   : > { %2987 = vmatprep.subr.mxu0 %v2213_v59  ;;  %3022 = vmatprep.subr.mxu1 %v2245_v60 }
 0x7d7   : > { %2988 = vmatpush3.msra.mxu0 %v2197_v19  ;;  %3023 = vmatpush3.msra.mxu1 %v2229_v61 }
 0x7d8   : > { %2989 = vmatprep.subr.mxu0 %v2212_v62  ;;  %3024 = vmatprep.subr.mxu1 %v2244_v63 }
 0x7d9   : > { %2990 = vmatpush3.msra.mxu0 %v2196_v0  ;;  %3025 = vmatpush3.msra.mxu1 %v2228_v3 }
 0x7da   : > { %2991 = vmatprep.subr.mxu0 %v2211_v21  ;;  %3026 = vmatprep.subr.mxu1 %v2243_v4 }
 0x7db   : > { %2992 = vmatpush3.msra.mxu0 %v2195_v5  ;;  %3027 = vmatpush3.msra.mxu1 %v2227_v6 }
 0x7dc   : > { %2993 = vmatprep.subr.mxu0 %v2210_v7  ;;  %3028 = vmatprep.subr.mxu1 %v2242_v10  ;;  %v2398_v7 = vld [vmem:[%s4466_s10 + $0x8] sm:$0xff] }
 0x7dd   : > { %2994 = vmatpush3.msra.mxu0 %v2194_v12  ;;  %3029 = vmatpush3.msra.mxu1 %v2226_v14  ;;  %v2399_v12 = vld [vmem:[%s4466_s10 + $0x10] sm:$0xff]  ;;  %v2400_v14 = vld [vmem:[%s4466_s10 + $0x18] sm:$0xff] }
 0x7de   : > { %2995 = vmatprep.subr.mxu0 %v2209_v35  ;;  %3030 = vmatprep.subr.mxu1 %v2241_v36  ;;  %v2401_v35 = vld [vmem:[%s4466_s10 + $0x20] sm:$0xff]  ;;  %v2402_v36 = vld [vmem:[%s4466_s10 + $0x28] sm:$0xff] }
 0x7df   : > { %2996 = vmatpush3.msra.mxu0 %v2193_v8  ;;  %3031 = vmatpush3.msra.mxu1 %v2225_v9  ;;  %v2403_v8 = vld [vmem:[%s4466_s10 + $0x30] sm:$0xff]  ;;  %v2404_v9 = vld [vmem:[%s4466_s10 + $0x38] sm:$0xff] }
 0x7e0   : > { %2997 = vmatprep.subr.mxu0 %v2208_v11  ;;  %3032 = vmatprep.subr.mxu1 %v2240_v15  ;;  %v2537_v11 = vld [vmem:[%s4467_s11] sm:$0xf] }
 0x7e1   : > { %2998 = vmatpush3.msra.mxu0 %v2192_v17  ;;  %3033 = vmatpush3.msra.mxu1 %v2224_v20 }
 0x7e2   : > { %2999 = vmatprep.subr.mxu0 %v2207_v22  ;;  %3034 = vmatprep.subr.mxu1 %v2239_v24 }
 0x7e3   : > { %3000 = vmatpush3.msra.mxu0 %v2191_v25  ;;  %3035 = vmatpush3.msra.mxu1 %v2223_v26 }
 0x7e4   : > { %3001 = vmatprep.subr.mxu0 %v2206_v29  ;;  %3036 = vmatprep.subr.mxu1 %v2238_v30 }
 0x7e5   : > { %3002 = vmatpush3.msra.mxu0 %v2190_v31  ;;  %3037 = vmatpush3.msra.mxu1 %v2222_v32 }
 0x7e6   : > { %3003 = vmatprep.subr.mxu0 %v2205_v2  ;;  %3038 = vmatprep.subr.mxu1 %v2237_v33 }
 0x7e7   : > { %3004 = vmatpush3.msra.mxu0 %v2189_v34  ;;  %3039 = vmatpush3.msra.mxu1 %v2221_v37 }
 0x7e8   : > { %3005 = vmatprep.subr.mxu0 %v2204_v38  ;;  %3040 = vmatprep.subr.mxu1 %v2236_v39 }
 0x7e9   : > { %3006 = vmatpush3.msra.mxu0 %v2188_v40  ;;  %3041 = vmatpush3.msra.mxu1 %v2220_v41 }
 0x7ea   : > { %3007 = vmatprep.subr.mxu0 %v2203_v42  ;;  %3042 = vmatprep.subr.mxu1 %v2235_v43 }
 0x7eb   : > { %3008 = vmatpush3.msra.mxu0 %v2187_v44  ;;  %3043 = vmatpush3.msra.mxu1 %v2219_v45 }
 0x7ec   : > { %3155 = vmatprep.subr.msk.mxu1 %vm796_vm2, %v2537_v11 }
 0x88c   : > { %v2075_v46 = vpop.f32.mrf.mxu0  ;;  %v2146_v47 = vpop.f32.mrf.mxu1 }
 0x88d   : > { %v2151_v48 = vsub.f32 %v4116_v23, %v2075_v46  ;;  %v2153_v49 = vsub.f32 %v4123_v28, %v2146_v47  ;;  %v2159_v28 = vld [vmem:[%s4464_s8] sm:$0xff] }
 0x88e   : > { %v2077_v13 = vpop.f32.mrf.mxu0  ;;  %v2148_v50 = vpop.f32.mrf.mxu1 }
 0x88f   : > { %v2155_v51 = vmul.f32 %v2151_v48, %v2151_v48  ;;  %v2157_v52 = vmul.f32 %v2153_v49, %v2153_v49  ;;  %v2152_v53 = vsub.f32 %v4114_v18, %v2077_v13  ;;  %v2154_v54 = vsub.f32 %v4120_v27, %v2148_v50  ;;  %v2160_v18 = vld [vmem:[%s4464_s8 + $0x8] sm:$0xff] }
 0x891   : > { %v2156_v55 = vmul.f32 %v2152_v53, %v2152_v53  ;;  %v2158_v16 = vmul.f32 %v2154_v54, %v2154_v54  ;;  %v2164_v56 = vrot.slane %v2155_v51, %v4108_v1  ;;  %v2172_v57 = vrot.slane %v2157_v52, %v4108_v1 }
 0x893   : > { %v2168_v58 = vrot.slane %v2156_v55, %v4108_v1  ;;  %v2176_v23 = vrot.slane %v2158_v16, %v4108_v1  ;;  %v2397_v1 = vld [vmem:[%s4466_s10] sm:$0xff] }
 0x895   : > { %v2181_v59 = vcombine.low %v2164_v56, %v2168_v58  ;;  %v2182_v27 = vcombine.low %v2172_v57, %v2176_v23 }
 0x897   : > { %v2185_v60 = vmul.f32 %v2181_v59, %v2159_v28  ;;  %v2186_v19 = vmul.f32 %v2182_v27, %v2160_v18 }
 0x899   : > { %v2253_v61 = vcombine.high %v2185_v60, %v2185_v60  ;;  %v2254_v62 = vcombine.high %v2186_v19, %v2186_v19 }
 0x89b   : > { %2321 = vmatprep.mubr.f32.mxu0 %v2253_v61  ;;  %2391 = vmatprep.mubr.f32.mxu1 %v2254_v62 }
 0x89c   : > { %2322 = vmatmul.mubr.f32.vlgmr.msra.gmra.mxu0 %v2185_v60  ;;  %2392 = vmatmul.mubr.f32.vlgmr.msra.gmra.mxu1 %v2186_v19 }
 0x89d   : > { %3143 = vmatprep.mubr.msk.f32.mxu0 %vm792_vm3, %v2397_v1  ;;  %3156 = vmatpush3.msk.msra.mxu1 %vm796_vm2, %v2537_v11 }
 0x95c   : > { %v3009_v63 = vpop.f32.mrf.mxu0  ;;  %v3044_v0 = vpop.f32.mrf.mxu1 }
 0x95e   : > { %v3010_v3 = vpop.f32.mrf.mxu0  ;;  %v3045_v21 = vpop.f32.mrf.mxu1 }
 0x95f   : > { %v3011_v4 = vadd.f32 %v3010_v3, %v3009_v63  ;;  %v3046_v5 = vadd.f32 %v3045_v21, %v3044_v0 }
 0x961   : > { %v2394_v6 = vadd.f32 %v3046_v5, %v3011_v4 }
 0x963   : > { %3141 = vmatprep.subr.msk.mxu0 %vm796_vm2, %v2394_v6  ;;  %v2679_v10 = vsel %vm2678_vm6, %v2394_v6, 0.0 }
 0x964   : > { %3142 = vmatpush3.msk.msra.mxu0 %vm796_vm2, %v2394_v6  ;;  %2680 = vadd.xlane.f32.xlu0 %v2679_v10 }
 0x965   : > { %3144 = vmatmul.mubr.msk.f32.vlgmr.msra.gmra.mxu0 %vm792_vm3, %v2398_v7 }
 0x966   : > { %3146 = vmatprep.mubr.msk.f32.mxu0 %vm792_vm3, %v2399_v12 }
 0x969   : > { %3147 = vmatmul.mubr.msk.f32.gmra.mxu0 %vm792_vm3, %v2400_v14 }
 0x96a   : > { %3149 = vmatprep.mubr.msk.f32.mxu0 %vm792_vm3, %v2401_v35 }
 0x96d   : > { %3150 = vmatmul.mubr.msk.f32.gmra.mxu0 %vm792_vm3, %v2402_v36 }
 0x96e   : > { %3152 = vmatprep.mubr.msk.f32.mxu0 %vm792_vm3, %v2403_v8 }
 0x971   : > { %3153 = vmatmul.mubr.msk.f32.gmra.mxu0 %vm792_vm3, %v2404_v9 }
 0x9ed   : > { %v2681_v15 = vpop.xlane.xlu0 %2680 }
 0x9ee   : > { %v2682_v17 = vsel %vm796_vm2, %v2681_v15, 0.0 }
 0x9ef   : > { %v2683_v20 = vrot.slane %v2682_v17, 4 }
 0x9f1   : > { %v2684_v22 = vadd.f32 %v2683_v20, %v2682_v17 }
 0x9f3   : > { %v2685_v24 = vrot.slane %v2684_v22, 2 }
 0x9f5   : > { %v2686_v25 = vadd.f32 %v2685_v24, %v2684_v22 }
 0x9f7   : > { %v2687_v26 = vrot.slane %v2686_v25, 1 }
 0x9f9   : > { %v2688_v29 = vadd.f32 %v2687_v26, %v2686_v25 }
 0x9fb   : > { %2689 = vst [vmem:[%s452_s17] sm:$0xff] %v2688_v29  ;;  %s3290_s17 = smov [#allocation2]  }
 0x9fc   : > { %s3230_s21 = sshll.u32 %s3290_s17, 4  ;;  %s3231_s21 = int_to_ptr.vmem [resolvable:$false] %s3230_s21 }
 0x9fd   : > { %s3232_s22 = scalar_lea.vmem %s3231_s21, 2048  ;;  %p3233_p1 = scmp.lt.s32.totalorder %s4412_s23, %s3231_s21 }
 0x9fe   : > { %p3234_p2 = scmp.lt.s32.totalorder %s3232_s22, %s3226_s15 }
 0xa00   : > { %p3235_p3 = por %p3234_p2, %p3233_p1 }
 0xa02   : > { %p3236_p4 = pnand %p3235_p3, %p3229_p0 }
 0xa25   : > { %v3145_v30 = vpop.f32.mrf.mxu0 }
 0xa27   : > { %v2498_v31 = vpop.f32.mrf.mxu0 }
 0xa28   : > { %3157 = vmatprep.mubr.msk.f32.mxu1 %vm792_vm3, %v2498_v31 }
 0xa29   : > { %v3148_v32 = vpop.f32.mrf.mxu0  ;;  %3158 = vmatmul.mubr.msk.f32.vlgmr.msra.gmra.mxu1 %vm792_vm3, %v3145_v30 }
 0xa2b   : > { %v2508_v2 = vpop.f32.mrf.mxu0 }
 0xa2c   : > { %3160 = vmatprep.mubr.msk.f32.mxu1 %vm792_vm3, %v2508_v2 }
 0xa2d   : > { %v3151_v33 = vpop.f32.mrf.mxu0  ;;  %3161 = vmatmul.mubr.msk.f32.gmra.mxu1 %vm792_vm3, %v3148_v32 }
 0xa2f   : > { %v2518_v34 = vpop.f32.mrf.mxu0 }
 0xa30   : > { %3163 = vmatprep.mubr.msk.f32.mxu1 %vm792_vm3, %v2518_v34 }
 0xa31   : > { %v3154_v37 = vpop.f32.mrf.mxu0  ;;  %3164 = vmatmul.mubr.msk.f32.gmra.mxu1 %vm792_vm3, %v3151_v33 }
 0xa33   : > { %v2528_v38 = vpop.f32.mrf.mxu0 }
 0xa34   : > { %3166 = vmatprep.mubr.msk.f32.mxu1 %vm792_vm3, %v2528_v38 }
 0xa35   : > { %3167 = vmatmul.mubr.msk.f32.gmra.mxu1 %vm792_vm3, %v3154_v37 }
 0xae9   : > { %v3159_v39 = vpop.f32.mrf.mxu1 }
 0xaea   : > { %2671 = vst.msk [vmem:[%s435_s20 + $0x8] sm:$0xff] %vm488_vm0, %v3159_v39 }
 0xaeb   : > { %v2631_v40 = vpop.f32.mrf.mxu1 }
 0xaec   : > { %2670 = vst.msk [vmem:[%s435_s20] sm:$0xff] %vm488_vm0, %v2631_v40 }
 0xaed   : > { %v3162_v41 = vpop.f32.mrf.mxu1 }
 0xaee   : > { %2673 = vst.msk [vmem:[%s435_s20 + $0x18] sm:$0xff] %vm488_vm0, %v3162_v41 }
 0xaef   : > { %v2641_v42 = vpop.f32.mrf.mxu1 }
 0xaf0   : > { %2672 = vst.msk [vmem:[%s435_s20 + $0x10] sm:$0xff] %vm488_vm0, %v2641_v42 }
 0xaf1   : > { %v3165_v43 = vpop.f32.mrf.mxu1 }
 0xaf2   : > { %2675 = vst.msk [vmem:[%s435_s20 + $0x28] sm:$0xff] %vm488_vm0, %v3165_v43 }
 0xaf3   : > { %v2651_v44 = vpop.f32.mrf.mxu1 }
 0xaf4   : > { %2674 = vst.msk [vmem:[%s435_s20 + $0x20] sm:$0xff] %vm488_vm0, %v2651_v44 }
 0xaf5   : > { %v3168_v45 = vpop.f32.mrf.mxu1 }
 0xaf6   : > { %2677 = vst.msk [vmem:[%s435_s20 + $0x38] sm:$0xff] %vm488_vm0, %v3168_v45 }
 0xaf7   : > { %v2661_v46 = vpop.f32.mrf.mxu1 }
 0xaf8   : > { %2676 = vst.msk [vmem:[%s435_s20 + $0x30] sm:$0xff] %vm488_vm0, %v2661_v46 }
 0xaf9   : > { %3239 = shalt.err (!%p3236_p4)
}
 0xafa   : > { %s3240_s16 = scalar_lea.hbm %s4410_s0, 1024  ;;  %s3244_s30 = scalar_lea.hbm %s4468_s12, 2048 }
 0xafb   : > { %p3241_p7 = scmp.ne.s32.totalorder %s4410_s0, %s3240_s16  ;;  %p3245_p10 = scmp.lt.s32.totalorder %s4410_s0, %s4468_s12 }
 0xafc   : > { %p3246_p11 = scmp.lt.s32.totalorder %s3244_s30, %s3240_s16 }
 0xafd   : > { %p3242_p8 = pnand %p3241_p7, %p3401_p5 }
 0xafe   : > { %p3247_p12 = por %p3246_p11, %p3245_p10 }
 0xaff   : > { %p3243_p9 = pneg %p3242_p8 }
 0xb01   : > { %p3248_p13 = pnand %p3247_p12, %p3243_p9 }
 0xb03   : > { %3251 = shalt.err (!%p3248_p13)
}
 0xb04   : > { %s3291_s15 = smov 128   ;;  %s3292_s21 = smov 8  }
 0xb05   : > { %3169 = dma.vmem_to_hbm [thread:$0]  (%p3401_p5), %s4412_s23, 1024, %s4410_s0, %s4416_s29, %s3291_s15, %s3291_s15, %s3292_s21  }
 0xb06 PF: > { %p3175_p0 = scmp.ge.s32.totalorder %s3286_s28, 2  ;;  %s2726_s22 = sand.u32 1, %s3274_s25  }
 0xb07   : > { %s2727_s1 = scalar_lea.sflag [#allocation3], %s2726_s22 }
 0xb08   : > { %p3172_p1 = pnand %p3175_p0, %p3405_p6 }
 0xb0a   : > { %p3173_p2 = pneg %p3172_p1 }
 0xb0c   : > { %3269 = dma.done.wait (%p3173_p2), %s2727_s1, 1024  }
 0xb0d   : > { %3271 = vsyncadd (%p3173_p2), %s2727_s1, 4294966272  ;;  %s4477_s16 = sld [smem:[#allocation5_spill]]  ;;  %p24_p3 = scmp.ge.s32.totalorder %s3388_s14, 4  }
 0xb0e   : > { %s4478_s25 = smov %s3278_s26  ;;  %s4479_s26 = smov %s3282_s27 }
 0xb0f   : > { %s4481_s28 = smov %s3388_s14  ;;  %26 = sbr.rel (!%p24_p3) target bundleno = 6 (0x6), region = 121 }
 0xb13   : > { %s4480_s27 = smov %s4477_s16 }
 0xb14   :  { %2739 = vsyncpa [#allocation3], 1 }
 0xb15   :  { %2741 = vsyncpa [#allocation3 + $0x1], 1 }

</bundles_post_ra>
